<compile_context>
chip_gen: v7x
topology: tpu7x:2x2x1
jax: 0.10.0
libtpu: 0.0.40
codegen_flags: <defaults>
</compile_context>

<pallas_src>
import functools
import math

import jax
import jax.numpy as jnp
from jax.experimental import pallas as pl
from jax.experimental.pallas import tpu as pltpu

N_HEADS = 2
LN_EPS = 1e-5


def _layernorm(v, g, b):
    # single-pass: E[x], E[x^2] together -> one fewer cross-lane reduction
    mu = jnp.mean(v, axis=-1, keepdims=True)
    mu2 = jnp.mean(v * v, axis=-1, keepdims=True)
    var = mu2 - mu * mu
    return (v - mu) * jax.lax.rsqrt(var + LN_EPS) * g + b


def self_attention_kernel(x_ref, w_ref, vec_ref, bqkv_ref, o_ref, *,
                          seq_len, head_dim, n_heads):
    M, C = x_ref.shape               # M = B * S  (flattened rows)
    nb = M // seq_len
    hd = head_dim

    x = x_ref[...]                   # (M, C) f32
    W = w_ref[...]                   # (C, 6C) bf16 packed weight slab
    vec = vec_ref[...]               # (8, C)  f32 packed vectors
    bqkv = bqkv_ref[...]             # (1, 3C) f32 fused qkv bias

    ln1_g = vec[0:1, :]
    ln1_b = vec[1:2, :]
    ln2_g = vec[2:3, :]
    ln2_b = vec[3:4, :]
    bo = vec[4:5, :]
    b1 = vec[5:6, :]
    b2 = vec[6:7, :]

    # ---- pre-attention LayerNorm (f32) ----
    x_ln = _layernorm(x, ln1_g, ln1_b)

    # ---- fused QKV projection: one bf16 matmul, f32 accumulate ----
    qkv = jnp.dot(x_ln.astype(jnp.bfloat16), W[:, 0:3 * C],
                  preferred_element_type=jnp.float32) + bqkv   # (M, 3C)

    # ---- per-head attention (static unroll, 2 heads) ----
    attn = jnp.zeros((M, C), dtype=jnp.float32)
    for h in range(n_heads):
        q = qkv[:, h * hd:(h + 1) * hd]                  # scale already folded in
        k = qkv[:, C + h * hd:C + (h + 1) * hd]
        v = qkv[:, 2 * C + h * hd:2 * C + (h + 1) * hd]
        qb = q.reshape(nb, seq_len, hd).astype(jnp.bfloat16)
        kb = k.reshape(nb, seq_len, hd).astype(jnp.bfloat16)
        vb = v.reshape(nb, seq_len, hd).astype(jnp.bfloat16)

        # contraction over the last dim of both operands (no materialized k.T)
        s = jnp.einsum("bqd,bkd->bqk", qb, kb,
                       preferred_element_type=jnp.float32)      # (nb, S, S) f32
        s = s - jnp.max(s, axis=-1, keepdims=True)
        p = jnp.exp(s)
        p = p * pl.reciprocal(jnp.sum(p, axis=-1, keepdims=True), approx=True)

        oh = jnp.einsum("bqk,bkd->bqd", p.astype(jnp.bfloat16), vb,
                        preferred_element_type=jnp.float32)     # (nb, S, hd) f32

        # per-head output projection accumulate (no lane-axis concat of heads)
        wo_h = W[h * hd:(h + 1) * hd, 3 * C:4 * C]              # (hd, C) bf16
        attn = attn + jnp.dot(oh.reshape(M, hd).astype(jnp.bfloat16), wo_h,
                              preferred_element_type=jnp.float32)
    attn = attn + bo

    # ---- residual ----
    h1 = attn + x

    # ---- feed-forward: LN -> Linear -> GELU (tanh approx, EUP) -> Linear ----
    h_ln = _layernorm(h1, ln2_g, ln2_b)
    ff = jnp.dot(h_ln.astype(jnp.bfloat16), W[:, 4 * C:5 * C],
                 preferred_element_type=jnp.float32) + b1
    ff = jax.nn.gelu(ff, approximate=True)
    ff = jnp.dot(ff.astype(jnp.bfloat16), W[:, 5 * C:6 * C],
                 preferred_element_type=jnp.float32) + b2

    # ---- residual + single contiguous (M, C) store ----
    o_ref[...] = h1 + ff


def self_attention_pallas(x_nchw, params, channels, size):
    B = x_nchw.shape[0]
    S = size * size
    C = channels
    H = N_HEADS
    hd = C // H
    M = B * S
    scale = 1.0 / math.sqrt(hd)

    # NCHW -> (B*S, C): channels on the lane axis, rows batch-major
    x_2d = jnp.transpose(x_nchw.reshape(B, C, S), (0, 2, 1)) \
              .reshape(M, C).astype(jnp.float32)

    # ---- host-side operand packing (done once, free) ----
    # matmul weights -> one bf16 slab (C, 6C): [Wq*scale | Wk | Wv | Wo | W1 | W2]
    w_slab = jnp.concatenate(
        [params["wq_t"] * scale, params["wk_t"], params["wv_t"],
         params["wo_t"], params["w1_t"], params["w2_t"]],
        axis=1).astype(jnp.bfloat16)
    # LN params + post-matmul biases (kept f32) -> one (8, C) slab
    vec_slab = jnp.stack(
        [params["ln1_g"], params["ln1_b"], params["ln2_g"], params["ln2_b"],
         params["bo"], params["b1"], params["b2"],
         jnp.zeros((C,), jnp.float32)])
    # fused QKV bias (1, 3C), scale folded into the Q part
    bqkv = jnp.concatenate(
        [params["bq"] * scale, params["bk"], params["bv"]]).reshape(1, 3 * C)

    kernel = functools.partial(self_attention_kernel,
                               seq_len=S, head_dim=hd, n_heads=H)

    out2d = pl.pallas_call(
        kernel,
        out_shape=jax.ShapeDtypeStruct((M, C), jnp.float32),
        grid=(1,),
        in_specs=[
            pl.BlockSpec((M, C), lambda i: (0, 0)),
            pl.BlockSpec(w_slab.shape, lambda i: (0, 0)),
            pl.BlockSpec(vec_slab.shape, lambda i: (0, 0)),
            pl.BlockSpec(bqkv.shape, lambda i: (0, 0)),
        ],
        out_specs=pl.BlockSpec((M, C), lambda i: (0, 0)),
        compiler_params=pltpu.CompilerParams(dimension_semantics=("arbitrary",)),
    )(x_2d, w_slab, vec_slab, bqkv)

    # (B*S, C) -> NCHW
    out = out2d.reshape(B, S, C)
    return jnp.transpose(out, (0, 2, 1)).reshape(B, C, size, size)


def self_attention_ref(x_nchw, params, channels, size):
    """Pure-JAX f32 reference with PyTorch-equivalent math (exact GELU)."""
    B = x_nchw.shape[0]
    S = size * size
    C = channels
    x = jnp.transpose(x_nchw.reshape(B, C, S), (0, 2, 1)).astype(jnp.float32)

    def ln(v, g, b):
        mu = jnp.mean(v, axis=-1, keepdims=True)
        var = jnp.mean((v - mu) ** 2, axis=-1, keepdims=True)
        return (v - mu) * jax.lax.rsqrt(var + LN_EPS) * g + b

    x_ln = ln(x, params["ln1_g"], params["ln1_b"])
    q = x_ln @ params["wq_t"] + params["bq"]
    k = x_ln @ params["wk_t"] + params["bk"]
    v = x_ln @ params["wv_t"] + params["bv"]
    hd = C // N_HEADS

    def split(t):  # (B, S, C) -> (B, H, S, hd)
        return jnp.transpose(t.reshape(B, S, N_HEADS, hd), (0, 2, 1, 3))

    qh, kh, vh = split(q), split(k), split(v)
    s = jnp.einsum("bhqd,bhkd->bhqk", qh, kh) / math.sqrt(hd)
    p = jax.nn.softmax(s, axis=-1)
    o = jnp.einsum("bhqk,bhkd->bhqd", p, vh)
    o = jnp.transpose(o, (0, 2, 1, 3)).reshape(B, S, C)
    attn = o @ params["wo_t"] + params["bo"]
    h1 = attn + x
    h_ln = ln(h1, params["ln2_g"], params["ln2_b"])
    ff = jax.nn.gelu(h_ln @ params["w1_t"] + params["b1"], approximate=False)
    ff = ff @ params["w2_t"] + params["b2"]
    out = h1 + ff
    return jnp.transpose(out, (0, 2, 1)).reshape(B, C, size, size)


def init_params(key, channels):
    C = channels
    keys = jax.random.split(key, 12)
    n = lambda k, shp: (0.02 * jax.random.normal(k, shp)).astype(jnp.float32)
    return {
        "ln1_g": jnp.ones((C,), jnp.float32),
        "ln1_b": jnp.zeros((C,), jnp.float32),
        # stored pre-transposed so the kernel computes x @ W (PyTorch Linear is x @ W.T)
        "wq_t": n(keys[0], (C, C)), "bq": n(keys[1], (C,)),
        "wk_t": n(keys[2], (C, C)), "bk": n(keys[3], (C,)),
        "wv_t": n(keys[4], (C, C)), "bv": n(keys[5], (C,)),
        "wo_t": n(keys[6], (C, C)), "bo": n(keys[7], (C,)),
        "ln2_g": jnp.ones((C,), jnp.float32),
        "ln2_b": jnp.zeros((C,), jnp.float32),
        "w1_t": n(keys[8], (C, C)), "b1": n(keys[9], (C,)),
        "w2_t": n(keys[10], (C, C)), "b2": n(keys[11], (C,)),
    }


if __name__ == "__main__":
    B, C, SIZE = 2, 32, 8          # channels must be divisible by 2 heads
    key = jax.random.PRNGKey(0)
    kx, kp = jax.random.split(key)
    x = jax.random.normal(kx, (B, C, SIZE, SIZE), dtype=jnp.float32)
    params = init_params(kp, C)

    out = jax.block_until_ready(self_attention_pallas(x, params, C, SIZE))
    ref = jax.block_until_ready(self_attention_ref(x, params, C, SIZE))

    assert out.shape == (B, C, SIZE, SIZE)
    err = float(jnp.max(jnp.abs(out - ref)))
    # tolerance 2e-3: bf16 matmul operands + tanh-GELU + approx softmax reciprocal
    # vs. the exact-f32 reference; observed error at these scales is ~1e-4.
    assert err < 2e-3, err
    print("KERNEL_OK")
</pallas_src>

<mosaic_0001>
module attributes {stable_mosaic.version = 11 : i64} {
  func.func @self_attention_kernel(%arg0: i32, %arg1: memref<128x32xf32, #tpu.memory_space<vmem>>, %arg2: memref<32x192xbf16, #tpu.memory_space<vmem>>, %arg3: memref<8x32xf32, #tpu.memory_space<vmem>>, %arg4: memref<1x96xf32, #tpu.memory_space<vmem>>, %arg5: memref<128x32xf32, #tpu.memory_space<vmem>>) attributes {dimension_semantics = [#tpu.dimension_semantics<arbitrary>], iteration_bounds = array<i64: 1>, scalar_prefetch = 0 : i64, scratch_operands = 0 : i64, tpu.core_type = #tpu.core_type<tc>, window_params = [{pipeline_mode = #tpu.pipeline_mode<synchronous>, transform_indices = @transform_0, window_bounds = array<i64: 128, 32>}, {pipeline_mode = #tpu.pipeline_mode<synchronous>, transform_indices = @transform_1, window_bounds = array<i64: 32, 192>}, {pipeline_mode = #tpu.pipeline_mode<synchronous>, transform_indices = @transform_2, window_bounds = array<i64: 8, 32>}, {pipeline_mode = #tpu.pipeline_mode<synchronous>, transform_indices = @transform_3, window_bounds = array<i64: 1, 96>}, {pipeline_mode = #tpu.pipeline_mode<synchronous>, transform_indices = @transform_4, window_bounds = array<i64: 128, 32>}]} {
    %c0 = arith.constant 0 : index
    %c0_0 = arith.constant 0 : index
    %0 = vector.load %arg1[%c0, %c0_0] : memref<128x32xf32, #tpu.memory_space<vmem>>, vector<128x32xf32>
    %c0_1 = arith.constant 0 : index
    %c0_2 = arith.constant 0 : index
    %1 = vector.load %arg2[%c0_1, %c0_2] : memref<32x192xbf16, #tpu.memory_space<vmem>>, vector<32x192xbf16>
    %c0_3 = arith.constant 0 : index
    %c0_4 = arith.constant 0 : index
    %2 = vector.load %arg3[%c0_3, %c0_4] : memref<8x32xf32, #tpu.memory_space<vmem>>, vector<8x32xf32>
    %c0_5 = arith.constant 0 : index
    %c0_6 = arith.constant 0 : index
    %3 = vector.load %arg4[%c0_5, %c0_6] : memref<1x96xf32, #tpu.memory_space<vmem>>, vector<1x96xf32>
    %4 = vector.extract_strided_slice %2 {offsets = [0, 0], sizes = [1, 32], strides = [1, 1]} : vector<8x32xf32> to vector<1x32xf32>
    %5 = vector.extract_strided_slice %2 {offsets = [1, 0], sizes = [1, 32], strides = [1, 1]} : vector<8x32xf32> to vector<1x32xf32>
    %6 = vector.extract_strided_slice %2 {offsets = [2, 0], sizes = [1, 32], strides = [1, 1]} : vector<8x32xf32> to vector<1x32xf32>
    %7 = vector.extract_strided_slice %2 {offsets = [3, 0], sizes = [1, 32], strides = [1, 1]} : vector<8x32xf32> to vector<1x32xf32>
    %8 = vector.extract_strided_slice %2 {offsets = [4, 0], sizes = [1, 32], strides = [1, 1]} : vector<8x32xf32> to vector<1x32xf32>
    %9 = vector.extract_strided_slice %2 {offsets = [5, 0], sizes = [1, 32], strides = [1, 1]} : vector<8x32xf32> to vector<1x32xf32>
    %10 = vector.extract_strided_slice %2 {offsets = [6, 0], sizes = [1, 32], strides = [1, 1]} : vector<8x32xf32> to vector<1x32xf32>
    %cst = arith.constant dense<0.000000e+00> : vector<128xf32>
    %11 = vector.multi_reduction <add>, %0, %cst [1] : vector<128x32xf32> to vector<128xf32>
    %12 = vector.shape_cast %11 : vector<128xf32> to vector<128x1xf32>
    %cst_7 = arith.constant 3.200000e+01 : f32
    %13 = vector.broadcast %cst_7 : f32 to vector<128x1xf32>
    %14 = arith.divf %12, %13 : vector<128x1xf32>
    %15 = arith.mulf %0, %0 : vector<128x32xf32>
    %cst_8 = arith.constant dense<0.000000e+00> : vector<128xf32>
    %16 = vector.multi_reduction <add>, %15, %cst_8 [1] : vector<128x32xf32> to vector<128xf32>
    %17 = vector.shape_cast %16 : vector<128xf32> to vector<128x1xf32>
    %cst_9 = arith.constant 3.200000e+01 : f32
    %18 = vector.broadcast %cst_9 : f32 to vector<128x1xf32>
    %19 = arith.divf %17, %18 : vector<128x1xf32>
    %20 = arith.mulf %14, %14 : vector<128x1xf32>
    %21 = arith.subf %19, %20 : vector<128x1xf32>
    %22 = vector.broadcast %14 : vector<128x1xf32> to vector<128x32xf32>
    %23 = arith.subf %0, %22 : vector<128x32xf32>
    %cst_10 = arith.constant 9.99999974E-6 : f32
    %24 = vector.broadcast %cst_10 : f32 to vector<128x1xf32>
    %25 = arith.addf %21, %24 : vector<128x1xf32>
    %26 = math.rsqrt %25 : vector<128x1xf32>
    %27 = vector.broadcast %26 : vector<128x1xf32> to vector<128x32xf32>
    %28 = arith.mulf %23, %27 : vector<128x32xf32>
    %29 = vector.broadcast %4 : vector<1x32xf32> to vector<128x32xf32>
    %30 = arith.mulf %28, %29 : vector<128x32xf32>
    %31 = vector.broadcast %5 : vector<1x32xf32> to vector<128x32xf32>
    %32 = arith.addf %30, %31 : vector<128x32xf32>
    %33 = arith.truncf %32 : vector<128x32xf32> to vector<128x32xbf16>
    %34 = vector.extract_strided_slice %1 {offsets = [0, 0], sizes = [32, 96], strides = [1, 1]} : vector<32x192xbf16> to vector<32x96xbf16>
    %cst_11 = arith.constant dense<0.000000e+00> : vector<128x96xf32>
    %35 = tpu.matmul %33, %34, %cst_11 {dimension_numbers = #tpu.dot_dimension_numbers<[1], [0], [0], [1], [0, 0, 1, 1], [], []>} : vector<128x32xbf16>, vector<32x96xbf16>, vector<128x96xf32> -> vector<128x96xf32>
    %36 = vector.broadcast %3 : vector<1x96xf32> to vector<128x96xf32>
    %37 = arith.addf %35, %36 : vector<128x96xf32>
    %cst_12 = arith.constant 0.000000e+00 : f32
    %38 = vector.broadcast %cst_12 : f32 to vector<128x32xf32>
    %39 = vector.extract_strided_slice %37 {offsets = [0, 0], sizes = [128, 16], strides = [1, 1]} : vector<128x96xf32> to vector<128x16xf32>
    %40 = vector.extract_strided_slice %37 {offsets = [0, 32], sizes = [128, 16], strides = [1, 1]} : vector<128x96xf32> to vector<128x16xf32>
    %41 = vector.extract_strided_slice %37 {offsets = [0, 64], sizes = [128, 16], strides = [1, 1]} : vector<128x96xf32> to vector<128x16xf32>
    %42 = vector.shape_cast %39 : vector<128x16xf32> to vector<2x64x16xf32>
    %43 = arith.truncf %42 : vector<2x64x16xf32> to vector<2x64x16xbf16>
    %44 = vector.shape_cast %40 : vector<128x16xf32> to vector<2x64x16xf32>
    %45 = arith.truncf %44 : vector<2x64x16xf32> to vector<2x64x16xbf16>
    %46 = vector.shape_cast %41 : vector<128x16xf32> to vector<2x64x16xf32>
    %47 = arith.truncf %46 : vector<2x64x16xf32> to vector<2x64x16xbf16>
    "tpu.trace_start"() <{level = 10 : i32, message = "bqd,bkd->bqk"}> : () -> ()
    %cst_13 = arith.constant dense<0.000000e+00> : vector<2x64x64xf32>
    %48 = tpu.matmul %43, %45, %cst_13 {dimension_numbers = #tpu.dot_dimension_numbers<[2], [2], [1], [1], [0, 0, 0, 1, 1, 1], [0], [0]>} : vector<2x64x16xbf16>, vector<2x64x16xbf16>, vector<2x64x64xf32> -> vector<2x64x64xf32>
    "tpu.trace_stop"() : () -> ()
    %cst_14 = arith.constant dense<0xFF800000> : vector<2x64xf32>
    %49 = vector.multi_reduction <maximumf>, %48, %cst_14 [2] : vector<2x64x64xf32> to vector<2x64xf32>
    %50 = vector.shape_cast %49 : vector<2x64xf32> to vector<2x64x1xf32>
    %51 = vector.broadcast %50 : vector<2x64x1xf32> to vector<2x64x64xf32>
    %52 = arith.subf %48, %51 : vector<2x64x64xf32>
    %53 = math.exp %52 : vector<2x64x64xf32>
    %cst_15 = arith.constant dense<0.000000e+00> : vector<2x64xf32>
    %54 = vector.multi_reduction <add>, %53, %cst_15 [2] : vector<2x64x64xf32> to vector<2x64xf32>
    %55 = vector.shape_cast %54 : vector<2x64xf32> to vector<2x64x1xf32>
    %56 = tpu.reciprocal %55 {approx = true} : vector<2x64x1xf32> -> vector<2x64x1xf32>
    %57 = vector.broadcast %56 : vector<2x64x1xf32> to vector<2x64x64xf32>
    %58 = arith.mulf %53, %57 : vector<2x64x64xf32>
    %59 = arith.truncf %58 : vector<2x64x64xf32> to vector<2x64x64xbf16>
    "tpu.trace_start"() <{level = 10 : i32, message = "bqk,bkd->bqd"}> : () -> ()
    %cst_16 = arith.constant dense<0.000000e+00> : vector<2x64x16xf32>
    %60 = tpu.matmul %59, %47, %cst_16 {dimension_numbers = #tpu.dot_dimension_numbers<[2], [1], [1], [2], [0, 0, 0, 1, 1, 2], [0], [0]>} : vector<2x64x64xbf16>, vector<2x64x16xbf16>, vector<2x64x16xf32> -> vector<2x64x16xf32>
    "tpu.trace_stop"() : () -> ()
    %61 = vector.extract_strided_slice %1 {offsets = [0, 96], sizes = [16, 32], strides = [1, 1]} : vector<32x192xbf16> to vector<16x32xbf16>
    %62 = vector.shape_cast %60 : vector<2x64x16xf32> to vector<128x16xf32>
    %63 = arith.truncf %62 : vector<128x16xf32> to vector<128x16xbf16>
    %cst_17 = arith.constant dense<0.000000e+00> : vector<128x32xf32>
    %64 = tpu.matmul %63, %61, %cst_17 {dimension_numbers = #tpu.dot_dimension_numbers<[1], [0], [0], [1], [0, 0, 1, 1], [], []>} : vector<128x16xbf16>, vector<16x32xbf16>, vector<128x32xf32> -> vector<128x32xf32>
    %65 = arith.addf %38, %64 : vector<128x32xf32>
    %66 = vector.extract_strided_slice %37 {offsets = [0, 16], sizes = [128, 16], strides = [1, 1]} : vector<128x96xf32> to vector<128x16xf32>
    %67 = vector.extract_strided_slice %37 {offsets = [0, 48], sizes = [128, 16], strides = [1, 1]} : vector<128x96xf32> to vector<128x16xf32>
    %68 = vector.extract_strided_slice %37 {offsets = [0, 80], sizes = [128, 16], strides = [1, 1]} : vector<128x96xf32> to vector<128x16xf32>
    %69 = vector.shape_cast %66 : vector<128x16xf32> to vector<2x64x16xf32>
    %70 = arith.truncf %69 : vector<2x64x16xf32> to vector<2x64x16xbf16>
    %71 = vector.shape_cast %67 : vector<128x16xf32> to vector<2x64x16xf32>
    %72 = arith.truncf %71 : vector<2x64x16xf32> to vector<2x64x16xbf16>
    %73 = vector.shape_cast %68 : vector<128x16xf32> to vector<2x64x16xf32>
    %74 = arith.truncf %73 : vector<2x64x16xf32> to vector<2x64x16xbf16>
    "tpu.trace_start"() <{level = 10 : i32, message = "bqd,bkd->bqk"}> : () -> ()
    %cst_18 = arith.constant dense<0.000000e+00> : vector<2x64x64xf32>
    %75 = tpu.matmul %70, %72, %cst_18 {dimension_numbers = #tpu.dot_dimension_numbers<[2], [2], [1], [1], [0, 0, 0, 1, 1, 1], [0], [0]>} : vector<2x64x16xbf16>, vector<2x64x16xbf16>, vector<2x64x64xf32> -> vector<2x64x64xf32>
    "tpu.trace_stop"() : () -> ()
    %cst_19 = arith.constant dense<0xFF800000> : vector<2x64xf32>
    %76 = vector.multi_reduction <maximumf>, %75, %cst_19 [2] : vector<2x64x64xf32> to vector<2x64xf32>
    %77 = vector.shape_cast %76 : vector<2x64xf32> to vector<2x64x1xf32>
    %78 = vector.broadcast %77 : vector<2x64x1xf32> to vector<2x64x64xf32>
    %79 = arith.subf %75, %78 : vector<2x64x64xf32>
    %80 = math.exp %79 : vector<2x64x64xf32>
    %cst_20 = arith.constant dense<0.000000e+00> : vector<2x64xf32>
    %81 = vector.multi_reduction <add>, %80, %cst_20 [2] : vector<2x64x64xf32> to vector<2x64xf32>
    %82 = vector.shape_cast %81 : vector<2x64xf32> to vector<2x64x1xf32>
    %83 = tpu.reciprocal %82 {approx = true} : vector<2x64x1xf32> -> vector<2x64x1xf32>
    %84 = vector.broadcast %83 : vector<2x64x1xf32> to vector<2x64x64xf32>
    %85 = arith.mulf %80, %84 : vector<2x64x64xf32>
    %86 = arith.truncf %85 : vector<2x64x64xf32> to vector<2x64x64xbf16>
    "tpu.trace_start"() <{level = 10 : i32, message = "bqk,bkd->bqd"}> : () -> ()
    %cst_21 = arith.constant dense<0.000000e+00> : vector<2x64x16xf32>
    %87 = tpu.matmul %86, %74, %cst_21 {dimension_numbers = #tpu.dot_dimension_numbers<[2], [1], [1], [2], [0, 0, 0, 1, 1, 2], [0], [0]>} : vector<2x64x64xbf16>, vector<2x64x16xbf16>, vector<2x64x16xf32> -> vector<2x64x16xf32>
    "tpu.trace_stop"() : () -> ()
    %88 = vector.extract_strided_slice %1 {offsets = [16, 96], sizes = [16, 32], strides = [1, 1]} : vector<32x192xbf16> to vector<16x32xbf16>
    %89 = vector.shape_cast %87 : vector<2x64x16xf32> to vector<128x16xf32>
    %90 = arith.truncf %89 : vector<128x16xf32> to vector<128x16xbf16>
    %cst_22 = arith.constant dense<0.000000e+00> : vector<128x32xf32>
    %91 = tpu.matmul %90, %88, %cst_22 {dimension_numbers = #tpu.dot_dimension_numbers<[1], [0], [0], [1], [0, 0, 1, 1], [], []>} : vector<128x16xbf16>, vector<16x32xbf16>, vector<128x32xf32> -> vector<128x32xf32>
    %92 = arith.addf %65, %91 : vector<128x32xf32>
    %93 = vector.broadcast %8 : vector<1x32xf32> to vector<128x32xf32>
    %94 = arith.addf %92, %93 : vector<128x32xf32>
    %95 = arith.addf %94, %0 : vector<128x32xf32>
    %cst_23 = arith.constant dense<0.000000e+00> : vector<128xf32>
    %96 = vector.multi_reduction <add>, %95, %cst_23 [1] : vector<128x32xf32> to vector<128xf32>
    %97 = vector.shape_cast %96 : vector<128xf32> to vector<128x1xf32>
    %cst_24 = arith.constant 3.200000e+01 : f32
    %98 = vector.broadcast %cst_24 : f32 to vector<128x1xf32>
    %99 = arith.divf %97, %98 : vector<128x1xf32>
    %100 = arith.mulf %95, %95 : vector<128x32xf32>
    %cst_25 = arith.constant dense<0.000000e+00> : vector<128xf32>
    %101 = vector.multi_reduction <add>, %100, %cst_25 [1] : vector<128x32xf32> to vector<128xf32>
    %102 = vector.shape_cast %101 : vector<128xf32> to vector<128x1xf32>
    %cst_26 = arith.constant 3.200000e+01 : f32
    %103 = vector.broadcast %cst_26 : f32 to vector<128x1xf32>
    %104 = arith.divf %102, %103 : vector<128x1xf32>
    %105 = arith.mulf %99, %99 : vector<128x1xf32>
    %106 = arith.subf %104, %105 : vector<128x1xf32>
    %107 = vector.broadcast %99 : vector<128x1xf32> to vector<128x32xf32>
    %108 = arith.subf %95, %107 : vector<128x32xf32>
    %cst_27 = arith.constant 9.99999974E-6 : f32
    %109 = vector.broadcast %cst_27 : f32 to vector<128x1xf32>
    %110 = arith.addf %106, %109 : vector<128x1xf32>
    %111 = math.rsqrt %110 : vector<128x1xf32>
    %112 = vector.broadcast %111 : vector<128x1xf32> to vector<128x32xf32>
    %113 = arith.mulf %108, %112 : vector<128x32xf32>
    %114 = vector.broadcast %6 : vector<1x32xf32> to vector<128x32xf32>
    %115 = arith.mulf %113, %114 : vector<128x32xf32>
    %116 = vector.broadcast %7 : vector<1x32xf32> to vector<128x32xf32>
    %117 = arith.addf %115, %116 : vector<128x32xf32>
    %118 = arith.truncf %117 : vector<128x32xf32> to vector<128x32xbf16>
    %119 = vector.extract_strided_slice %1 {offsets = [0, 128], sizes = [32, 32], strides = [1, 1]} : vector<32x192xbf16> to vector<32x32xbf16>
    %cst_28 = arith.constant dense<0.000000e+00> : vector<128x32xf32>
    %120 = tpu.matmul %118, %119, %cst_28 {dimension_numbers = #tpu.dot_dimension_numbers<[1], [0], [0], [1], [0, 0, 1, 1], [], []>} : vector<128x32xbf16>, vector<32x32xbf16>, vector<128x32xf32> -> vector<128x32xf32>
    %121 = vector.broadcast %9 : vector<1x32xf32> to vector<128x32xf32>
    %122 = arith.addf %120, %121 : vector<128x32xf32>
    %123 = arith.mulf %122, %122 : vector<128x32xf32>
    %124 = arith.mulf %122, %123 : vector<128x32xf32>
    %cst_29 = arith.constant 4.471500e-02 : f32
    %125 = vector.broadcast %cst_29 : f32 to vector<128x32xf32>
    %126 = arith.mulf %125, %124 : vector<128x32xf32>
    %127 = arith.addf %122, %126 : vector<128x32xf32>
    %cst_30 = arith.constant 0.797884583 : f32
    %128 = vector.broadcast %cst_30 : f32 to vector<128x32xf32>
    %129 = arith.mulf %128, %127 : vector<128x32xf32>
    %130 = math.tanh %129 : vector<128x32xf32>
    %cst_31 = arith.constant 1.000000e+00 : f32
    %131 = vector.broadcast %cst_31 : f32 to vector<128x32xf32>
    %132 = arith.addf %131, %130 : vector<128x32xf32>
    %cst_32 = arith.constant 5.000000e-01 : f32
    %133 = vector.broadcast %cst_32 : f32 to vector<128x32xf32>
    %134 = arith.mulf %133, %132 : vector<128x32xf32>
    %135 = arith.mulf %122, %134 : vector<128x32xf32>
    %136 = arith.truncf %135 : vector<128x32xf32> to vector<128x32xbf16>
    %137 = vector.extract_strided_slice %1 {offsets = [0, 160], sizes = [32, 32], strides = [1, 1]} : vector<32x192xbf16> to vector<32x32xbf16>
    %cst_33 = arith.constant dense<0.000000e+00> : vector<128x32xf32>
    %138 = tpu.matmul %136, %137, %cst_33 {dimension_numbers = #tpu.dot_dimension_numbers<[1], [0], [0], [1], [0, 0, 1, 1], [], []>} : vector<128x32xbf16>, vector<32x32xbf16>, vector<128x32xf32> -> vector<128x32xf32>
    %139 = vector.broadcast %10 : vector<1x32xf32> to vector<128x32xf32>
    %140 = arith.addf %138, %139 : vector<128x32xf32>
    %141 = arith.addf %95, %140 : vector<128x32xf32>
    %c0_34 = arith.constant 0 : index
    %c0_35 = arith.constant 0 : index
    %142 = vector.load %arg5[%c0_34, %c0_35] : memref<128x32xf32, #tpu.memory_space<vmem>>, vector<128x32xf32>
    tpu.vector_store %arg5[%c0_34, %c0_35], %141 {strides = array<i32>} : memref<128x32xf32, #tpu.memory_space<vmem>>, vector<128x32xf32>,
    return
  }
  func.func @transform_0(%arg0: i32) -> (i32, i32) {
    %c0_i32 = arith.constant 0 : i32
    %c0_i32_0 = arith.constant 0 : i32
    %c0_i32_1 = arith.constant 0 : i32
    return %c0_i32, %c0_i32_0 : i32, i32
  }
  func.func @transform_1(%arg0: i32) -> (i32, i32) {
    %c0_i32 = arith.constant 0 : i32
    %c0_i32_0 = arith.constant 0 : i32
    %c0_i32_1 = arith.constant 0 : i32
    return %c0_i32, %c0_i32_0 : i32, i32
  }
  func.func @transform_2(%arg0: i32) -> (i32, i32) {
    %c0_i32 = arith.constant 0 : i32
    %c0_i32_0 = arith.constant 0 : i32
    %c0_i32_1 = arith.constant 0 : i32
    return %c0_i32, %c0_i32_0 : i32, i32
  }
  func.func @transform_3(%arg0: i32) -> (i32, i32) {
    %c0_i32 = arith.constant 0 : i32
    %c0_i32_0 = arith.constant 0 : i32
    %c0_i32_1 = arith.constant 0 : i32
    return %c0_i32, %c0_i32_0 : i32, i32
  }
  func.func @transform_4(%arg0: i32) -> (i32, i32) {
    %c0_i32 = arith.constant 0 : i32
    %c0_i32_0 = arith.constant 0 : i32
    %c0_i32_1 = arith.constant 0 : i32
    return %c0_i32, %c0_i32_0 : i32, i32
  }
}

</mosaic_0001>

<bundles_post_ra>
// kernel: tpu_custom_call.1
= control target key start
LH: loop header
LB: loop body
LE: loop exit
PB: predicated region body
PF: predicated region fallthrough
CT: control target
= control target key end

     0   :  { %vm40_vm0 = vcmask 261120   ;;  %vm489_vm1 = vcmask 130048   ;;  %s3356_s29 = smov 96   ;;  %s3358_s30 = smov 80   ;;  %vm680_vm2 = vcmask 523264   ;;  %s4782_s0 = inlined_call_operand.vmem [shape: f32[128,32], index: 0, kind: input, shape index: {}]   ;;  %s4783_s1 = inlined_call_operand.vmem [shape: bf16[32,192], index: 1, kind: input, shape index: {}]   ;;  %s4784_s2 = inlined_call_operand.vmem [shape: f32[8,32], index: 2, kind: input, shape index: {}]   ;;  %s4785_s3 = inlined_call_operand.vmem [shape: f32[1,96], index: 3, kind: input, shape index: {}]   ;;  %s4786_s4 = inlined_call_operand.vmem [shape: f32[128,32], index: 4, kind: output, shape index: {}]  }
   0x1   :  { %v3390_v0 = vld [vmem:[%s4782_s0 + $0x10] sm:$0xff]  ;;  %v3395_v1 = vld [vmem:[%s4782_s0] sm:$0xff]  ;;  %v3400_v2 = vld [vmem:[%s4782_s0 + $0x18] sm:$0xff]  ;;  %s3359_s5 = smov 112   ;;  %s3360_s6 = smov 48  }
   0x2   :  { %v47_v3 = vsel %vm40_vm0, %v3390_v0, 0.0  ;;  %v41_v4 = vsel %vm40_vm0, %v3395_v1, 0.0  ;;  %v3409_v5 = vld [vmem:[%s4782_s0 + $0x8] sm:$0xff]  ;;  %v50_v6 = vsel %vm40_vm0, %v3400_v2, 0.0  ;;  %v106_v9 = vmul.f32 %v3395_v1, %v3395_v1  ;;  %v3435_v17 = vld [vmem:[%s4782_s0 + $0x20] sm:$0xff]  ;;  %v3444_v20 = vld [vmem:[%s4782_s0 + $0x38] sm:$0xff] }
   0x3   :  { %48 = vadd.xlane.f32.xlu1 %v47_v3  ;;  %42 = vadd.xlane.f32.xlu0 %v41_v4  ;;  %v44_v7 = vsel %vm40_vm0, %v3409_v5, 0.0  ;;  %v107_v8 = vmul.f32 %v3409_v5, %v3409_v5  ;;  %v109_v12 = vmul.f32 %v3400_v2, %v3400_v2  ;;  %v108_v13 = vmul.f32 %v3390_v0, %v3390_v0  ;;  %v3430_v16 = vld [vmem:[%s4782_s0 + $0x28] sm:$0xff]  ;;  %v3449_v21 = vld [vmem:[%s4782_s0 + $0x30] sm:$0xff]  ;;  %v3475_v33 = vld [vmem:[%s4782_s0 + $0x40] sm:$0xff]  ;;  %s3361_s9 = smov 32  }
   0x4   :  { %v122_v11 = vsel %vm40_vm0, %v106_v9, 0.0  ;;  %v56_v18 = vsel %vm40_vm0, %v3430_v16, 0.0  ;;  %v53_v19 = vsel %vm40_vm0, %v3435_v17, 0.0  ;;  %v62_v22 = vsel %vm40_vm0, %v3444_v20, 0.0  ;;  %v3470_v32 = vld [vmem:[%s4782_s0 + $0x48] sm:$0xff]  ;;  %v3484_v36 = vld [vmem:[%s4782_s0 + $0x58] sm:$0xff] }
   0x5   :  { %v125_v10 = vsel %vm40_vm0, %v107_v8, 0.0  ;;  %v131_v14 = vsel %vm40_vm0, %v109_v12, 0.0  ;;  %v128_v15 = vsel %vm40_vm0, %v108_v13, 0.0  ;;  %v59_v23 = vsel %vm40_vm0, %v3449_v21, 0.0  ;;  %v3489_v37 = vld [vmem:[%s4782_s0 + $0x50] sm:$0xff]  ;;  %v3510_v48 = vld [vmem:[%s4782_s0 + $0x68] sm:$0xff] }
   0x6   :  { %v111_v24 = vmul.f32 %v3430_v16, %v3430_v16  ;;  %v110_v25 = vmul.f32 %v3435_v17, %v3435_v17  ;;  %v113_v28 = vmul.f32 %v3444_v20, %v3444_v20  ;;  %v112_v29 = vmul.f32 %v3449_v21, %v3449_v21  ;;  %v3515_v49 = vld [vmem:[%s4782_s0 + $0x60] sm:$0xff]  ;;  %v3527_v53 = vld [vmem:[%s4782_s0 + $0x78] sm:$0xff]  ;;  %v3532_v54 = vld [vmem:[%s4782_s0 + $0x70] sm:$0xff] }
   0x7   :  { %51 = vadd.xlane.f32.xlu1 %v50_v6  ;;  %45 = vadd.xlane.f32.xlu0 %v44_v7  ;;  %v68_v34 = vsel %vm40_vm0, %v3470_v32, 0.0  ;;  %v65_v35 = vsel %vm40_vm0, %v3475_v33, 0.0  ;;  %v74_v38 = vsel %vm40_vm0, %v3484_v36, 0.0  ;;  %v71_v39 = vsel %vm40_vm0, %v3489_v37, 0.0  ;;  %v3106_v50 = vld [vmem:[%s4783_s1] ss:$8 sps:$4 sm:$0xff]  }
   0x8   :  { %v137_v26 = vsel %vm40_vm0, %v111_v24, 0.0  ;;  %v134_v27 = vsel %vm40_vm0, %v110_v25, 0.0  ;;  %v143_v30 = vsel %vm40_vm0, %v113_v28, 0.0  ;;  %v140_v31 = vsel %vm40_vm0, %v112_v29, 0.0  ;;  %2844 = vmatprep.subr.bf16.mxu0 %v3106_v50  ;;  %v3108_v55 = vld [vmem:[%s4783_s1 + $0x10] ss:$8 sps:$4 sm:$0xff]  }
   0x9   :  { %v115_v40 = vmul.f32 %v3470_v32, %v3470_v32  ;;  %v114_v41 = vmul.f32 %v3475_v33, %v3475_v33  ;;  %v117_v44 = vmul.f32 %v3484_v36, %v3484_v36  ;;  %v116_v45 = vmul.f32 %v3489_v37, %v3489_v37  ;;  %2845 = vmatpush3.bf16.msra.mxu0 %v3106_v50 }
   0xa   :  { %v80_v51 = vsel %vm40_vm0, %v3510_v48, 0.0  ;;  %v77_v52 = vsel %vm40_vm0, %v3515_v49, 0.0  ;;  %v86_v56 = vsel %vm40_vm0, %v3527_v53, 0.0  ;;  %v83_v57 = vsel %vm40_vm0, %v3532_v54, 0.0  ;;  %2846 = vmatprep.subr.bf16.mxu0 %v3108_v55 }
   0xb   :  { %126 = vadd.xlane.f32.xlu1 %v125_v10  ;;  %123 = vadd.xlane.f32.xlu0 %v122_v11  ;;  %v149_v42 = vsel %vm40_vm0, %v115_v40, 0.0  ;;  %v146_v43 = vsel %vm40_vm0, %v114_v41, 0.0  ;;  %v155_v46 = vsel %vm40_vm0, %v117_v44, 0.0  ;;  %v152_v47 = vsel %vm40_vm0, %v116_v45, 0.0 }
   0xc   :  { %v119_v58 = vmul.f32 %v3510_v48, %v3510_v48  ;;  %v118_v59 = vmul.f32 %v3515_v49, %v3515_v49  ;;  %v121_v62 = vmul.f32 %v3527_v53, %v3527_v53  ;;  %v120_v63 = vmul.f32 %v3532_v54, %v3532_v54 }
   0xd   :  { %2847 = vmatpush3.bf16.msra.mxu0 %v3108_v55 }
   0xe   :  { %v161_v60 = vsel %vm40_vm0, %v119_v58, 0.0  ;;  %v158_v61 = vsel %vm40_vm0, %v118_v59, 0.0  ;;  %v167_v3 = vsel %vm40_vm0, %v121_v62, 0.0  ;;  %v164_v4 = vsel %vm40_vm0, %v120_v63, 0.0 }
   0xf   :  { %132 = vadd.xlane.f32.xlu1 %v131_v14  ;;  %129 = vadd.xlane.f32.xlu0 %v128_v15 }
  0x13   :  { %57 = vadd.xlane.f32.xlu1 %v56_v18  ;;  %54 = vadd.xlane.f32.xlu0 %v53_v19 }
  0x17   :  { %63 = vadd.xlane.f32.xlu1 %v62_v22  ;;  %60 = vadd.xlane.f32.xlu0 %v59_v23 }
  0x1b   :  { %138 = vadd.xlane.f32.xlu1 %v137_v26  ;;  %135 = vadd.xlane.f32.xlu0 %v134_v27  ;;  %v282_v26 = vlaneseq }
  0x1d   :  { %v3561_v41 = vshrl.u32 %v282_v26, 7 }
  0x1f   :  { %144 = vadd.xlane.f32.xlu1 %v143_v30  ;;  %141 = vadd.xlane.f32.xlu0 %v140_v31 }
  0x23   :  { %69 = vadd.xlane.f32.xlu1 %v68_v34  ;;  %66 = vadd.xlane.f32.xlu0 %v65_v35 }
  0x27   :  { %75 = vadd.xlane.f32.xlu1 %v74_v38  ;;  %72 = vadd.xlane.f32.xlu0 %v71_v39 }
  0x2b   :  { %150 = vadd.xlane.f32.xlu1 %v149_v42  ;;  %147 = vadd.xlane.f32.xlu0 %v146_v43 }
  0x2f   :  { %156 = vadd.xlane.f32.xlu1 %v155_v46  ;;  %153 = vadd.xlane.f32.xlu0 %v152_v47  ;;  %v284_v46 = vsub.s32 0, %v3561_v41 }
  0x33   :  { %81 = vadd.xlane.f32.xlu1 %v80_v51  ;;  %78 = vadd.xlane.f32.xlu0 %v77_v52  ;;  %v38_v51 = vld [vmem:[%s4784_s2] sm:$0xff] }
  0x37   :  { %87 = vadd.xlane.f32.xlu1 %v86_v56  ;;  %84 = vadd.xlane.f32.xlu0 %v83_v57  ;;  %v304_v56 = vsub.s32 1, %v3561_v41  ;;  %v3572_v57 = vrot.slane %v38_v51, %v284_v46 }
  0x3b   :  { %162 = vadd.xlane.f32.xlu1 %v161_v60  ;;  %159 = vadd.xlane.f32.xlu0 %v158_v61 }
  0x3f   :  { %168 = vadd.xlane.f32.xlu1 %v167_v3  ;;  %165 = vadd.xlane.f32.xlu0 %v164_v4 }
  0x90   :  { %v49_v6 = vpop.xlane.xlu1 %48  ;;  %v43_v7 = vpop.xlane.xlu0 %42 }
  0x91   :  { %v90_v10 = vmul.f32 0.03125, %v43_v7  ;;  %v3553_v12 = vmul.f32 0.03125, %v49_v6 }
  0x93   :  { %v186_v18 = vmul.f32 %v90_v10, %v90_v10  ;;  %v188_v27 = vmul.f32 %v3553_v12, %v3553_v12  ;;  %v218_v58 = vsub.f32 %v3395_v1, %v90_v10  ;;  %v3584_v1 = vrot.slane %v38_v51, %v304_v56 }
  0x94   :  { %v52_v8 = vpop.xlane.xlu1 %51  ;;  %v46_v9 = vpop.xlane.xlu0 %45 }
  0x95   :  { %v91_v11 = vmul.f32 0.03125, %v46_v9  ;;  %v3555_v13 = vmul.f32 0.03125, %v52_v8 }
  0x97   :  { %v187_v19 = vmul.f32 %v91_v11, %v91_v11  ;;  %v189_v28 = vmul.f32 %v3555_v13, %v3555_v13  ;;  %v219_v59 = vsub.f32 %v3409_v5, %v91_v11  ;;  %v220_v5 = vsub.f32 %v3390_v0, %v3553_v12 }
  0x98   :  { %v127_v14 = vpop.xlane.xlu1 %126  ;;  %v124_v15 = vpop.xlane.xlu0 %123 }
  0x99   :  { %v171_v22 = vmul.f32 0.03125, %v127_v14  ;;  %v170_v23 = vmul.f32 0.03125, %v124_v15 }
  0x9b   :  { %v203_v24 = vsub.f32 %v171_v22, %v187_v19  ;;  %v202_v25 = vsub.f32 %v170_v23, %v186_v18  ;;  %v221_v18 = vsub.f32 %v3400_v2, %v3555_v13 }
  0x9c   :  { %v133_v29 = vpop.xlane.xlu1 %132  ;;  %v130_v30 = vpop.xlane.xlu0 %129 }
  0x9d   :  { %v235_v31 = vadd.f32 1e-05, %v203_v24  ;;  %v234_v34 = vadd.f32 1e-05, %v202_v25  ;;  %v173_v35 = vmul.f32 0.03125, %v133_v29  ;;  %v172_v38 = vmul.f32 0.03125, %v130_v30 }
  0x9f   :  { %3112 = vrsqrt.f32 %v235_v31  ;;  %v205_v39 = vsub.f32 %v173_v35, %v189_v28  ;;  %v204_v40 = vsub.f32 %v172_v38, %v188_v27 }
  0xa0   :  { %3114 = vrsqrt.f32 %v234_v34  ;;  %v58_v42 = vpop.xlane.xlu1 %57  ;;  %v55_v43 = vpop.xlane.xlu0 %54 }
  0xa1   :  { %v237_v44 = vadd.f32 1e-05, %v205_v39  ;;  %v236_v45 = vadd.f32 1e-05, %v204_v40  ;;  %v3567_v52 = vmul.f32 0.03125, %v58_v42  ;;  %v3569_v55 = vmul.f32 0.03125, %v55_v43 }
  0xa3   :  { %3116 = vrsqrt.f32 %v237_v44  ;;  %v191_v4 = vmul.f32 %v3567_v52, %v3567_v52  ;;  %v190_v6 = vmul.f32 %v3569_v55, %v3569_v55 }
  0xa4   :  { %3118 = vrsqrt.f32 %v236_v45  ;;  %v64_v47 = vpop.xlane.xlu1 %63  ;;  %v61_v50 = vpop.xlane.xlu0 %60 }
  0xa5   :  { %v3576_v60 = vmul.f32 0.03125, %v64_v47  ;;  %v3578_v61 = vmul.f32 0.03125, %v61_v50 }
  0xa7   :  { %v193_v19 = vmul.f32 %v3576_v60, %v3576_v60  ;;  %v192_v22 = vmul.f32 %v3578_v61, %v3578_v61 }
  0xa8   :  { %v139_v62 = vpop.xlane.xlu1 %138  ;;  %v136_v63 = vpop.xlane.xlu0 %135 }
  0xa9   :  { %v3113_v3 = vpop.eup %3112  ;;  %v175_v7 = vmul.f32 0.03125, %v139_v62  ;;  %v174_v8 = vmul.f32 0.03125, %v136_v63  ;;  %v223_v63 = vsub.f32 %v3430_v16, %v3567_v52 }
  0xaa   :  { %v3115_v9 = vpop.eup %3114  ;;  %v267_v14 = vmul.f32 %v3113_v3, %v219_v59  ;;  %v222_v3 = vsub.f32 %v3435_v17, %v3569_v55  ;;  %v225_v17 = vsub.f32 %v3444_v20, %v3576_v60 }
  0xab   :  { %v207_v10 = vsub.f32 %v175_v7, %v191_v4  ;;  %v206_v11 = vsub.f32 %v174_v8, %v190_v6  ;;  %v266_v15 = vmul.f32 %v3115_v9, %v218_v58 }
  0xac   :  { %v145_v23 = vpop.xlane.xlu1 %144  ;;  %v142_v24 = vpop.xlane.xlu0 %141  ;;  %v287_v25 = vmul.f32 %v3572_v57, %v267_v14 }
  0xad   :  { %v3117_v26 = vpop.eup %3116  ;;  %v239_v27 = vadd.f32 1e-05, %v207_v10  ;;  %v238_v28 = vadd.f32 1e-05, %v206_v11  ;;  %v177_v0 = vmul.f32 0.03125, %v145_v23  ;;  %v176_v12 = vmul.f32 0.03125, %v142_v24 }
  0xae   :  { %v3119_v29 = vpop.eup %3118  ;;  %v286_v30 = vmul.f32 %v3572_v57, %v266_v15  ;;  %v307_v2 = vadd.f32 %v3584_v1, %v287_v25  ;;  %v269_v13 = vmul.f32 %v3117_v26, %v221_v18 }
  0xaf   :  { %3120 = vrsqrt.f32 %v239_v27  ;;  %v209_v31 = vsub.f32 %v177_v0, %v193_v19  ;;  %v208_v34 = vsub.f32 %v176_v12, %v192_v22  ;;  %v268_v35 = vmul.f32 %v3119_v29, %v220_v5 }
  0xb0   :  { %3122 = vrsqrt.f32 %v238_v28  ;;  %v70_v38 = vpop.xlane.xlu1 %69  ;;  %v67_v39 = vpop.xlane.xlu0 %66  ;;  %v306_v40 = vadd.f32 %v3584_v1, %v286_v30  ;;  %v289_v42 = vmul.f32 %v3572_v57, %v269_v13  ;;  %v224_v19 = vsub.f32 %v3449_v21, %v3578_v61 }
  0xb1   :  { %v241_v43 = vadd.f32 1e-05, %v209_v31  ;;  %v240_v44 = vadd.f32 1e-05, %v208_v34  ;;  %v288_v46 = vmul.f32 %v3572_v57, %v268_v35  ;;  %v3603_v58 = vmul.f32 0.03125, %v70_v38 }
  0xb2   :  { %v322_v45 = vpack.c.bf16 %v307_v2, %v306_v40  ;;  %v309_v47 = vadd.f32 %v3584_v1, %v289_v42  ;;  %v3605_v59 = vmul.f32 0.03125, %v67_v39 }
  0xb3   :  { %3124 = vrsqrt.f32 %v241_v43  ;;  %v308_v56 = vadd.f32 %v3584_v1, %v288_v46  ;;  %v195_v14 = vmul.f32 %v3603_v58, %v3603_v58 }
  0xb4   :  { %3126 = vrsqrt.f32 %v240_v44  ;;  %2848 = vmatprep.mubr.msk.bf16.mxu0 %vm40_vm0, %v322_v45  ;;  %v76_v50 = vpop.xlane.xlu1 %75  ;;  %v73_v51 = vpop.xlane.xlu0 %72  ;;  %v194_v5 = vmul.f32 %v3605_v59, %v3605_v59 }
  0xb5   :  { %v323_v62 = vpack.c.bf16 %v309_v47, %v308_v56  ;;  %v3611_v4 = vmul.f32 0.03125, %v76_v50  ;;  %v3613_v6 = vmul.f32 0.03125, %v73_v51 }
  0xb7   :  { %2849 = vmatmul.mubr.msk.bf16.vlgmr.msra.gmra.mrb[0].mxu0 %vm40_vm0, %v323_v62  ;;  %v197_v22 = vmul.f32 %v3611_v4, %v3611_v4  ;;  %v196_v23 = vmul.f32 %v3613_v6, %v3613_v6  ;;  %v227_v62 = vsub.f32 %v3470_v32, %v3603_v58  ;;  %v229_v32 = vsub.f32 %v3484_v36, %v3611_v4 }
  0xb8   :  { %v151_v7 = vpop.xlane.xlu1 %150  ;;  %v148_v8 = vpop.xlane.xlu0 %147 }
  0xb9   :  { %v3121_v9 = vpop.eup %3120  ;;  %v179_v10 = vmul.f32 0.03125, %v151_v7  ;;  %v178_v16 = vmul.f32 0.03125, %v148_v8 }
  0xba   :  { %v3123_v52 = vpop.eup %3122  ;;  %v271_v11 = vmul.f32 %v3121_v9, %v223_v63  ;;  %v226_v63 = vsub.f32 %v3475_v33, %v3605_v59 }
  0xbb   :  { %v211_v55 = vsub.f32 %v179_v10, %v195_v14  ;;  %v210_v15 = vsub.f32 %v178_v16, %v194_v5  ;;  %v270_v18 = vmul.f32 %v3123_v52, %v222_v3 }
  0xbc   :  { %v157_v24 = vpop.xlane.xlu1 %156  ;;  %v154_v25 = vpop.xlane.xlu0 %153  ;;  %v291_v26 = vmul.f32 %v3572_v57, %v271_v11 }
  0xbd   :  { %v3125_v27 = vpop.eup %3124  ;;  %v243_v28 = vadd.f32 1e-05, %v211_v55  ;;  %v242_v0 = vadd.f32 1e-05, %v210_v15  ;;  %v181_v20 = vmul.f32 0.03125, %v157_v24  ;;  %v180_v60 = vmul.f32 0.03125, %v154_v25 }
  0xbe   :  { %v3127_v12 = vpop.eup %3126  ;;  %v290_v29 = vmul.f32 %v3572_v57, %v270_v18  ;;  %v311_v21 = vadd.f32 %v3584_v1, %v291_v26  ;;  %v273_v61 = vmul.f32 %v3125_v27, %v225_v17  ;;  %v228_v55 = vsub.f32 %v3489_v37, %v3613_v6 }
  0xbf   :  { %3128 = vrsqrt.f32 %v243_v28  ;;  %v213_v30 = vsub.f32 %v181_v20, %v197_v22  ;;  %v212_v2 = vsub.f32 %v180_v60, %v196_v23  ;;  %v272_v13 = vmul.f32 %v3127_v12, %v224_v19 }
  0xc0   :  { %3130 = vrsqrt.f32 %v242_v0  ;;  %v82_v31 = vpop.xlane.xlu1 %81  ;;  %v79_v34 = vpop.xlane.xlu0 %78  ;;  %v310_v35 = vadd.f32 %v3584_v1, %v290_v29  ;;  %v293_v38 = vmul.f32 %v3572_v57, %v273_v61 }
  0xc1   :  { %v245_v39 = vadd.f32 1e-05, %v213_v30  ;;  %v244_v40 = vadd.f32 1e-05, %v212_v2  ;;  %v292_v43 = vmul.f32 %v3572_v57, %v272_v13  ;;  %v103_v50 = vmul.f32 0.03125, %v82_v31 }
  0xc2   :  { %v324_v42 = vpack.c.bf16 %v311_v21, %v310_v35  ;;  %v313_v44 = vadd.f32 %v3584_v1, %v293_v38  ;;  %v102_v51 = vmul.f32 0.03125, %v79_v34 }
  0xc3   :  { %3132 = vrsqrt.f32 %v245_v39  ;;  %v312_v47 = vadd.f32 %v3584_v1, %v292_v43  ;;  %v199_v5 = vmul.f32 %v103_v50, %v103_v50  ;;  %v231_v35 = vsub.f32 %v3510_v48, %v103_v50 }
  0xc4   :  { %3134 = vrsqrt.f32 %v244_v40  ;;  %2852 = vmatprep.mubr.msk.bf16.mxu0 %vm40_vm0, %v324_v42  ;;  %v88_v45 = vpop.xlane.xlu1 %87  ;;  %v85_v46 = vpop.xlane.xlu0 %84  ;;  %v198_v10 = vmul.f32 %v102_v51, %v102_v51  ;;  %v230_v39 = vsub.f32 %v3515_v49, %v102_v51 }
  0xc5   :  { %v325_v56 = vpack.c.bf16 %v313_v44, %v312_v47  ;;  %v3641_v3 = vmul.f32 0.03125, %v88_v45  ;;  %v3643_v7 = vmul.f32 0.03125, %v85_v46 }
  0xc7   :  { %2853 = vmatmul.mubr.msk.bf16.gmra.mrb[4].mxu0 %vm40_vm0, %v325_v56  ;;  %v201_v15 = vmul.f32 %v3641_v3, %v3641_v3  ;;  %v200_v18 = vmul.f32 %v3643_v7, %v3643_v7  ;;  %v233_v44 = vsub.f32 %v3527_v53, %v3641_v3  ;;  %v232_v47 = vsub.f32 %v3532_v54, %v3643_v7 }
  0xc8   :  { %v163_v8 = vpop.xlane.xlu1 %162  ;;  %v160_v9 = vpop.xlane.xlu0 %159 }
  0xc9   :  { %v3129_v14 = vpop.eup %3128  ;;  %v183_v16 = vmul.f32 0.03125, %v163_v8  ;;  %v182_v52 = vmul.f32 0.03125, %v160_v9 }
  0xca   :  { %v3131_v11 = vpop.eup %3130  ;;  %v275_v17 = vmul.f32 %v3129_v14, %v227_v62  ;;  %v2655_v14 = vld [vmem:[%s4785_s3] ss:$0 sm:$0xff]  ;;  %s3357_s3 = smov 64  }
  0xcb   :  { %v215_v58 = vsub.f32 %v183_v16, %v199_v5  ;;  %v214_v33 = vsub.f32 %v182_v52, %v198_v10  ;;  %v274_v59 = vmul.f32 %v3131_v11, %v226_v63 }
  0xcc   :  { %v169_v19 = vpop.xlane.xlu1 %168  ;;  %v166_v22 = vpop.xlane.xlu0 %165  ;;  %v295_v23 = vmul.f32 %v3572_v57, %v275_v17 }
  0xcd   :  { %v3133_v24 = vpop.eup %3132  ;;  %v247_v25 = vadd.f32 1e-05, %v215_v58  ;;  %v246_v26 = vadd.f32 1e-05, %v214_v33  ;;  %v185_v36 = vmul.f32 0.03125, %v169_v19  ;;  %v184_v4 = vmul.f32 0.03125, %v166_v22 }
  0xce   :  { %v3135_v27 = vpop.eup %3134  ;;  %v294_v28 = vmul.f32 %v3572_v57, %v274_v59  ;;  %v315_v37 = vadd.f32 %v3584_v1, %v295_v23  ;;  %v277_v6 = vmul.f32 %v3133_v24, %v229_v32 }
  0xcf   :  { %3136 = vrsqrt.f32 %v247_v25  ;;  %v217_v0 = vsub.f32 %v185_v36, %v201_v15  ;;  %v216_v20 = vsub.f32 %v184_v4, %v200_v18  ;;  %v276_v60 = vmul.f32 %v3135_v27, %v228_v55 }
  0xd0   :  { %3138 = vrsqrt.f32 %v246_v26  ;;  %v314_v12 = vadd.f32 %v3584_v1, %v294_v28  ;;  %v297_v29 = vmul.f32 %v3572_v57, %v277_v6 }
  0xd1   :  { %v249_v21 = vadd.f32 1e-05, %v217_v0  ;;  %v248_v61 = vadd.f32 1e-05, %v216_v20  ;;  %v296_v30 = vmul.f32 %v3572_v57, %v276_v60 }
  0xd2   :  { %v326_v2 = vpack.c.bf16 %v315_v37, %v314_v12  ;;  %v317_v13 = vadd.f32 %v3584_v1, %v297_v29 }
  0xd3   :  { %3140 = vrsqrt.f32 %v249_v21  ;;  %v316_v31 = vadd.f32 %v3584_v1, %v296_v30 }
  0xd4   :  { %3142 = vrsqrt.f32 %v248_v61  ;;  %2856 = vmatprep.mubr.msk.bf16.mxu0 %vm40_vm0, %v326_v2 }
  0xd5   :  { %v327_v34 = vpack.c.bf16 %v317_v13, %v316_v31 }
  0xd7   :  { %2857 = vmatmul.mubr.msk.bf16.gmra.mrb[8].mxu0 %vm40_vm0, %v327_v34 }
  0xd9   :  { %v3137_v38 = vpop.eup %3136 }
  0xda   :  { %v3139_v40 = vpop.eup %3138  ;;  %v279_v42 = vmul.f32 %v3137_v38, %v231_v35 }
  0xdb   :  { %v278_v43 = vmul.f32 %v3139_v40, %v230_v39 }
  0xdc   :  { %v299_v45 = vmul.f32 %v3572_v57, %v279_v42 }
  0xdd   :  { %v3141_v46 = vpop.eup %3140  ;;  %v298_v56 = vmul.f32 %v3572_v57, %v278_v43 }
  0xde   :  { %v3143_v62 = vpop.eup %3142  ;;  %v319_v48 = vadd.f32 %v3584_v1, %v299_v45  ;;  %v281_v50 = vmul.f32 %v3141_v46, %v233_v44 }
  0xdf   :  { %v318_v49 = vadd.f32 %v3584_v1, %v298_v56  ;;  %v280_v51 = vmul.f32 %v3143_v62, %v232_v47 }
  0xe0   :  { %v301_v63 = vmul.f32 %v3572_v57, %v281_v50 }
  0xe1   :  { %v328_v8 = vpack.c.bf16 %v319_v48, %v318_v49  ;;  %v300_v53 = vmul.f32 %v3572_v57, %v280_v51 }
  0xe2   :  { %v321_v3 = vadd.f32 %v3584_v1, %v301_v63 }
  0xe3   :  { %2860 = vmatprep.mubr.msk.bf16.mxu0 %vm40_vm0, %v328_v8  ;;  %v320_v54 = vadd.f32 %v3584_v1, %v300_v53 }
  0xe5   :  { %v329_v7 = vpack.c.bf16 %v321_v3, %v320_v54 }
  0xe7   :  { %2861 = vmatmul.mubr.msk.bf16.gmra.mrb[12].mxu0 %vm40_vm0, %v329_v7 }
 0x18a   :  { %v2850_v9 = vpop.f32.mrb[0].mxu0 }
 0x18b   :  { %v406_v5 = vpop.f32.mrb[1].mxu0  ;;  %v415_v16 = vadd.f32 %v2850_v9, %v2655_v14 }
 0x18c   :  { %v2851_v10 = vpop.f32.mrb[2].mxu0  ;;  %v407_v57 = vadd.f32 %v2655_v14, %v406_v5 }
 0x18d   :  { %v418_v52 = vadd.f32 %v2851_v10, %v2655_v14  ;;  %v409_v11 = vpop.f32.mrb[3].mxu0 }
 0x18e   :  { %v410_v17 = vadd.f32 %v2655_v14, %v409_v11 }
 0x18f   :  { %v3683_v32 = vpack.c.bf16 %v418_v52, %v415_v16 }
 0x190   :  { %v3685_v58 = vpack.c.bf16 %v410_v17, %v407_v57 }
 0x191   :  { %483 = vrot.lane.b32.xlu1 %v3683_v32, %s3356_s29 }
 0x192   :  { %481 = vrot.lane.b32.xlu0 %v3685_v58, %s3356_s29  ;;  %2872 = vmatprep.mubr.msk.bf16.mxu1 %vm489_vm1, %v3685_v58 }
 0x19a   :  { %v2854_v1 = vpop.f32.mrb[4].mxu0 }
 0x19b   :  { %v422_v33 = vpop.f32.mrb[5].mxu0  ;;  %v431_v55 = vadd.f32 %v2854_v1, %v2655_v14 }
 0x19c   :  { %v2855_v59 = vpop.f32.mrb[6].mxu0  ;;  %v423_v19 = vadd.f32 %v2655_v14, %v422_v33 }
 0x19d   :  { %v434_v15 = vadd.f32 %v2855_v59, %v2655_v14  ;;  %v425_v18 = vpop.f32.mrb[7].mxu0 }
 0x19e   :  { %v426_v22 = vadd.f32 %v2655_v14, %v425_v18 }
 0x19f   :  { %v3693_v23 = vpack.c.bf16 %v434_v15, %v431_v55 }
 0x1a0   :  { %v3695_v24 = vpack.c.bf16 %v426_v22, %v423_v19 }
 0x1a1   :  { %487 = vrot.lane.b32.xlu0 %v3693_v23, %s3356_s29 }
 0x1a2   :  { %485 = vrot.lane.b32.xlu1 %v3695_v24, %s3356_s29 }
 0x1aa   :  { %v2858_v25 = vpop.f32.mrb[8].mxu0 }
 0x1ab   :  { %v438_v26 = vpop.f32.mrb[9].mxu0  ;;  %v447_v4 = vadd.f32 %v2858_v25, %v2655_v14 }
 0x1ac   :  { %v2859_v36 = vpop.f32.mrb[10].mxu0  ;;  %v439_v37 = vadd.f32 %v2655_v14, %v438_v26 }
 0x1ad   :  { %v450_v27 = vadd.f32 %v2859_v36, %v2655_v14  ;;  %v441_v28 = vpop.f32.mrb[11].mxu0 }
 0x1ae   :  { %v442_v6 = vadd.f32 %v2655_v14, %v441_v28 }
 0x1af   :  { %v3701_v0 = vpack.c.bf16 %v450_v27, %v447_v4 }
 0x1b0   :  { %v3703_v20 = vpack.c.bf16 %v442_v6, %v439_v37 }
 0x1b2   :  { %583 = vrot.lane.b32.xlu1 %v3703_v20, %s3356_s29  ;;  %2888 = vmatprep.mubr.msk.bf16.mxu0 %vm489_vm1, %v3703_v20 }
 0x1b6   :  { %585 = vrot.lane.b32.xlu1 %v3701_v0, %s3356_s29 }
 0x1ba   :  { %v2862_v60 = vpop.f32.mrb[12].mxu0 }
 0x1bb   :  { %v454_v12 = vpop.f32.mrb[13].mxu0  ;;  %v463_v21 = vadd.f32 %v2862_v60, %v2655_v14 }
 0x1bc   :  { %v2863_v29 = vpop.f32.mrb[14].mxu0  ;;  %v455_v2 = vadd.f32 %v2655_v14, %v454_v12 }
 0x1bd   :  { %v466_v61 = vadd.f32 %v2863_v29, %v2655_v14  ;;  %v457_v30 = vpop.f32.mrb[15].mxu0 }
 0x1be   :  { %v458_v13 = vadd.f32 %v2655_v14, %v457_v30 }
 0x1bf   :  { %v3711_v31 = vpack.c.bf16 %v466_v61, %v463_v21 }
 0x1c0   :  { %v3713_v34 = vpack.c.bf16 %v458_v13, %v455_v2 }
 0x1c1   :  { %589 = vrot.lane.b32.xlu1 %v3711_v31, %s3356_s29 }
 0x1c2   :  { %587 = vrot.lane.b32.xlu0 %v3713_v34, %s3356_s29 }
 0x1c5   :  { %867 = vrot.lane.b32.xlu1 %v3683_v32, %s3357_s3 }
 0x1c6   :  { %865 = vrot.lane.b32.xlu0 %v3685_v58, %s3357_s3 }
 0x1c9   :  { %871 = vrot.lane.b32.xlu1 %v3693_v23, %s3357_s3 }
 0x1ca   :  { %869 = vrot.lane.b32.xlu0 %v3695_v24, %s3357_s3 }
 0x1cd   :  { %956 = vrot.lane.b32.xlu1 %v3701_v0, %s3357_s3 }
 0x1ce   :  { %954 = vrot.lane.b32.xlu0 %v3703_v20, %s3357_s3 }
 0x1d1   :  { %1059 = vrot.lane.b32.xlu1 %v3685_v58, %s3358_s30 }
 0x1d2   :  { %960 = vrot.lane.b32.xlu0 %v3711_v31, %s3357_s3 }
 0x1d5   :  { %1061 = vrot.lane.b32.xlu1 %v3683_v32, %s3358_s30 }
 0x1d6   :  { %1063 = vrot.lane.b32.xlu0 %v3695_v24, %s3358_s30 }
 0x1d9   :  { %1164 = vrot.lane.b32.xlu1 %v3703_v20, %s3358_s30 }
 0x1dd   :  { %1065 = vrot.lane.b32.xlu1 %v3693_v23, %s3358_s30 }
 0x1e1   :  { %1166 = vrot.lane.b32.xlu1 %v3701_v0, %s3358_s30 }
 0x1e5   :  { %958 = vrot.lane.b32.xlu1 %v3713_v34, %s3357_s3 }
 0x203   :  { %v484_v39 = vpop.permute.xlu1 %483 }
 0x204   :  { %v482_v35 = vpop.permute.xlu0 %481  ;;  %v506_v40 = vsel %vm489_vm1, %v484_v39, 0 }
 0x205   :  { %3084 = vmatprep.subr.msk.bf16.mxu1 %vm489_vm1, %v482_v35  ;;  %v503_v38 = vsel %vm489_vm1, %v482_v35, 0 }
 0x206   :  { %2865 = vmatpush3.bf16.xpose.msra.mxu1 %v503_v38 }
 0x207   :  { %3085 = vmatprep.subr.msk.bf16.mxu1 %vm489_vm1, %v484_v39 }
 0x20e   :  { %2867 = vmatpush3.bf16.xpose.msra.mxu1 %v506_v40 }
 0x213   :  { %v488_v44 = vpop.permute.xlu0 %487 }
 0x214   :  { %v486_v42 = vpop.permute.xlu1 %485  ;;  %v512_v45 = vsel %vm489_vm1, %v488_v44, 0 }
 0x215   :  { %3086 = vmatprep.subr.msk.bf16.mxu1 %vm489_vm1, %v486_v42  ;;  %v509_v43 = vsel %vm489_vm1, %v486_v42, 0 }
 0x216   :  { %2869 = vmatpush3.bf16.xpose.msra.mxu1 %v509_v43 }
 0x217   :  { %3087 = vmatprep.subr.msk.bf16.mxu1 %vm489_vm1, %v488_v44 }
 0x21e   :  { %2871 = vmatpush3.bf16.xpose.msra.mxu1 %v512_v45 }
 0x224   :  { %v584_v46 = vpop.permute.xlu1 %583 }
 0x225   :  { %3088 = vmatprep.subr.msk.bf16.mxu0 %vm489_vm1, %v584_v46  ;;  %v604_v47 = vsel %vm489_vm1, %v584_v46, 0  ;;  %2873 = vmatmul.mubr.msk.bf16.vlgmr.msra.gmra.mrb[0].mxu1 %vm489_vm1, %v3683_v32 }
 0x226   :  { %2881 = vmatpush3.bf16.xpose.msra.mxu0 %v604_v47  ;;  %2876 = vmatprep.mubr.msk.bf16.mxu1 %vm489_vm1, %v3695_v24 }
 0x228   :  { %v586_v56 = vpop.permute.xlu1 %585 }
 0x229   :  { %3089 = vmatprep.subr.msk.bf16.mxu0 %vm489_vm1, %v586_v56  ;;  %v607_v62 = vsel %vm489_vm1, %v586_v56, 0 }
 0x22d   :  { %2877 = vmatmul.mubr.msk.bf16.gmra.mrb[4].mxu1 %vm489_vm1, %v3693_v23 }
 0x22e   :  { %2883 = vmatpush3.bf16.xpose.msra.mxu0 %v607_v62 }
 0x233   :  { %v590_v48 = vpop.permute.xlu1 %589 }
 0x234   :  { %v588_v50 = vpop.permute.xlu0 %587  ;;  %v613_v3 = vsel %vm489_vm1, %v590_v48, 0 }
 0x235   :  { %3090 = vmatprep.subr.msk.bf16.mxu0 %vm489_vm1, %v588_v50  ;;  %v610_v49 = vsel %vm489_vm1, %v588_v50, 0 }
 0x236   :  { %2885 = vmatpush3.bf16.xpose.msra.mxu0 %v610_v49 }
 0x237   :  { %v868_v51 = vpop.permute.xlu1 %867  ;;  %3091 = vmatprep.subr.msk.bf16.mxu0 %vm489_vm1, %v590_v48 }
 0x238   :  { %v866_v63 = vpop.permute.xlu0 %865 }
 0x239   :  { %2896 = vmatprep.subr.bf16.mxu1 %v866_v63 }
 0x23a   :  { %2897 = vmatpush3.bf16.msra.mxu1 %v866_v63 }
 0x23b   :  { %v872_v8 = vpop.permute.xlu1 %871  ;;  %2898 = vmatprep.subr.bf16.mxu1 %v868_v51 }
 0x23c   :  { %v870_v53 = vpop.permute.xlu0 %869 }
 0x23e   :  { %2887 = vmatpush3.bf16.xpose.msra.mxu0 %v613_v3  ;;  %2899 = vmatpush3.bf16.msra.mxu1 %v868_v51 }
 0x23f   :  { %v957_v54 = vpop.permute.xlu1 %956  ;;  %2900 = vmatprep.subr.bf16.mxu1 %v870_v53 }
 0x240   :  { %v955_v7 = vpop.permute.xlu0 %954 }
 0x241   :  { %2912 = vmatprep.subr.bf16.mxu0 %v955_v7 }
 0x242   :  { %2901 = vmatpush3.bf16.msra.mxu1 %v870_v53 }
 0x243   :  { %v3761_v9 = vpop.permute.xlu1 %1059  ;;  %2902 = vmatprep.subr.bf16.mxu1 %v872_v8 }
 0x244   :  { %v961_v11 = vpop.permute.xlu0 %960 }
 0x245   :  { %2889 = vmatmul.mubr.msk.bf16.vlgmr.msra.gmra.mrb[16].mxu0 %vm489_vm1, %v3701_v0 }
 0x246   :  { %2892 = vmatprep.mubr.msk.bf16.mxu0 %vm489_vm1, %v3713_v34  ;;  %2903 = vmatpush3.bf16.msra.mxu1 %v872_v8 }
 0x247   :  { %2913 = vmatpush3.bf16.msra.mxu0 %v955_v7  ;;  %v3767_v14 = vpop.permute.xlu1 %1061  ;;  %3092 = vmatprep.subr.msk.bf16.mxu1 %vm489_vm1, %v3761_v9 }
 0x248   :  { %2914 = vmatprep.subr.bf16.mxu0 %v957_v54  ;;  %v3837_v44 = vpop.permute.xlu0 %1063 }
 0x24b   :  { %2915 = vmatpush3.bf16.msra.mxu0 %v957_v54  ;;  %v3771_v5 = vpop.permute.xlu1 %1164 }
 0x24d   :  { %2893 = vmatmul.mubr.msk.bf16.gmra.mrb[20].mxu0 %vm489_vm1, %v3711_v31 }
 0x24f   :  { %v3775_v10 = vpop.permute.xlu1 %1065 }
 0x253   :  { %v3777_v16 = vpop.permute.xlu1 %1166 }
 0x257   :  { %v959_v52 = vpop.permute.xlu1 %958 }
 0x258   :  { %2916 = vmatprep.subr.bf16.mxu0 %v959_v52 }
 0x259   :  { %2917 = vmatpush3.bf16.msra.mxu0 %v959_v52 }
 0x25a   :  { %2918 = vmatprep.subr.bf16.mxu0 %v961_v11 }
 0x25d   :  { %2919 = vmatpush3.bf16.msra.mxu0 %v961_v11 }
 0x25e   :  { %3096 = vmatprep.subr.msk.bf16.mxu0 %vm489_vm1, %v3771_v5 }
 0x2f8   :  { %v2874_v57 = vpop.f32.mrb[0].mxu1 }
 0x2f9   :  { %v548_v17 = vpop.f32.mrb[1].mxu1  ;;  %v687_v1 = vsel %vm680_vm2, %v2874_v57, -inf }
 0x2fa   :  { %688 = vmax.xlane.f32.xlu0 %v687_v1  ;;  %v2875_v33 = vpop.f32.mrb[2].mxu1  ;;  %v681_v15 = vsel %vm680_vm2, %v548_v17, -inf }
 0x2fb   :  { %v551_v59 = vpop.f32.mrb[3].mxu1  ;;  %v690_v22 = vsel %vm680_vm2, %v2875_v33, -inf }
 0x2fc   :  { %v684_v55 = vsel %vm680_vm2, %v551_v59, -inf }
 0x2fd   :  { %685 = vmax.xlane.f32.xlu1 %v684_v55 }
 0x2fe   :  { %682 = vmax.xlane.f32.xlu0 %v681_v15 }
 0x300   :  { %v3784_v18 = vpop.f32.mrb[4].mxu1 }
 0x301   :  { %v3786_v19 = vpop.f32.mrb[5].mxu1  ;;  %v699_v4 = vsel %vm680_vm2, %v3784_v18, -inf }
 0x302   :  { %691 = vmax.xlane.f32.xlu0 %v690_v22  ;;  %v3789_v25 = vpop.f32.mrb[6].mxu1  ;;  %v693_v28 = vsel %vm680_vm2, %v3786_v19, -inf }
 0x303   :  { %v3791_v26 = vpop.f32.mrb[7].mxu1  ;;  %v702_v36 = vsel %vm680_vm2, %v3789_v25, -inf }
 0x304   :  { %703 = vmax.xlane.f32.xlu1 %v702_v36  ;;  %v696_v27 = vsel %vm680_vm2, %v3791_v26, -inf }
 0x306   :  { %700 = vmax.xlane.f32.xlu0 %v699_v4 }
 0x308   :  { %697 = vmax.xlane.f32.xlu1 %v696_v27 }
 0x30a   :  { %694 = vmax.xlane.f32.xlu0 %v693_v28 }
 0x318   :  { %v3801_v37 = vpop.f32.mrb[16].mxu0 }
 0x319   :  { %v3803_v6 = vpop.f32.mrb[17].mxu0  ;;  %v711_v60 = vsel %vm680_vm2, %v3801_v37, -inf }
 0x31a   :  { %712 = vmax.xlane.f32.xlu0 %v711_v60  ;;  %v3807_v12 = vpop.f32.mrb[18].mxu0  ;;  %v705_v61 = vsel %vm680_vm2, %v3803_v6, -inf }
 0x31b   :  { %v3809_v29 = vpop.f32.mrb[19].mxu0  ;;  %v714_v21 = vsel %vm680_vm2, %v3807_v12, -inf }
 0x31c   :  { %715 = vmax.xlane.f32.xlu1 %v714_v21  ;;  %v708_v30 = vsel %vm680_vm2, %v3809_v29, -inf }
 0x31e   :  { %706 = vmax.xlane.f32.xlu0 %v705_v61 }
 0x320   :  { %709 = vmax.xlane.f32.xlu1 %v708_v30  ;;  %v3817_v2 = vpop.f32.mrb[20].mxu0 }
 0x321   :  { %v3819_v13 = vpop.f32.mrb[21].mxu0  ;;  %v723_v35 = vsel %vm680_vm2, %v3817_v2, -inf }
 0x322   :  { %724 = vmax.xlane.f32.xlu0 %v723_v35  ;;  %v3823_v38 = vpop.f32.mrb[22].mxu0  ;;  %v717_v42 = vsel %vm680_vm2, %v3819_v13, -inf }
 0x323   :  { %v3825_v39 = vpop.f32.mrb[23].mxu0  ;;  %v726_v40 = vsel %vm680_vm2, %v3823_v38, -inf }
 0x324   :  { %727 = vmax.xlane.f32.xlu1 %v726_v40  ;;  %v720_v43 = vsel %vm680_vm2, %v3825_v39, -inf }
 0x326   :  { %718 = vmax.xlane.f32.xlu0 %v717_v42 }
 0x328   :  { %721 = vmax.xlane.f32.xlu1 %v720_v43 }
 0x339   :  { %1053 = vrot.lane.b32.xlu1 %v3683_v32, %s3359_s5 }
 0x33c   :  { %1051 = vrot.lane.b32.xlu0 %v3685_v58, %s3359_s5 }
 0x387   :  { %v689_v45 = vpop.xlane.xlu0 %688 }
 0x388   :  { %v731_v46 = vsub.f32 %v2874_v57, %v689_v45 }
 0x38a   :  { %v749_v47 = vmul.f32 1.442695, %v731_v46  ;;  %v686_v56 = vpop.xlane.xlu1 %685 }
 0x38b   :  { %v683_v62 = vpop.xlane.xlu0 %682  ;;  %v730_v50 = vsub.f32 %v551_v59, %v686_v56 }
 0x38c   :  { %3144 = vpow2.f32 %v749_v47  ;;  %v729_v48 = vsub.f32 %v548_v17, %v683_v62 }
 0x38d   :  { %v747_v53 = vmul.f32 1.442695, %v730_v50 }
 0x38e   :  { %v745_v49 = vmul.f32 1.442695, %v729_v48 }
 0x38f   :  { %v692_v51 = vpop.xlane.xlu0 %691 }
 0x390   :  { %3146 = vpow2.f32 %v745_v49  ;;  %v732_v63 = vsub.f32 %v2875_v33, %v692_v51 }
 0x391   :  { %v704_v8 = vpop.xlane.xlu1 %703 }
 0x392   :  { %v751_v3 = vmul.f32 1.442695, %v732_v63  ;;  %v736_v57 = vsub.f32 %v3789_v25, %v704_v8 }
 0x393   :  { %v701_v54 = vpop.xlane.xlu0 %700 }
 0x394   :  { %3148 = vpow2.f32 %v751_v3  ;;  %v735_v7 = vsub.f32 %v3784_v18, %v701_v54  ;;  %v759_v18 = vmul.f32 1.442695, %v736_v57 }
 0x395   :  { %v698_v52 = vpop.xlane.xlu1 %697  ;;  %3150 = vpow2.f32 %v747_v53 }
 0x396   :  { %v3840_v11 = vpop.eup %3144  ;;  %v757_v1 = vmul.f32 1.442695, %v735_v7  ;;  %v734_v17 = vsub.f32 %v3791_v26, %v698_v52 }
 0x397   :  { %v695_v59 = vpop.xlane.xlu0 %694  ;;  %v783_v33 = vsel %vm680_vm2, %v3840_v11, 0.0 }
 0x398   :  { %3152 = vpow2.f32 %v757_v1  ;;  %v755_v55 = vmul.f32 1.442695, %v734_v17  ;;  %v733_v15 = vsub.f32 %v3786_v19, %v695_v59  ;;  %784 = vadd.xlane.f32.xlu0 %v783_v33 }
 0x39a   :  { %v3847_v22 = vpop.eup %3146  ;;  %3154 = vpow2.f32 %v755_v55  ;;  %v753_v36 = vmul.f32 1.442695, %v733_v15 }
 0x39b   :  { %v777_v25 = vsel %vm680_vm2, %v3847_v22, 0.0 }
 0x39c   :  { %3156 = vpow2.f32 %v753_v36  ;;  %778 = vadd.xlane.f32.xlu0 %v777_v25 }
 0x39d   :  { %3158 = vpow2.f32 %v759_v18 }
 0x39e   :  { %v3851_v26 = vpop.eup %3148 }
 0x39f   :  { %v786_v4 = vsel %vm680_vm2, %v3851_v26, 0.0  ;;  %v3855_v27 = vpop.eup %3150 }
 0x3a0   :  { %787 = vadd.xlane.f32.xlu1 %v786_v4  ;;  %v780_v28 = vsel %vm680_vm2, %v3855_v27, 0.0 }
 0x3a2   :  { %v3857_v19 = vpop.eup %3152 }
 0x3a3   :  { %v795_v60 = vsel %vm680_vm2, %v3857_v19, 0.0 }
 0x3a4   :  { %v3863_v21 = vpop.eup %3154  ;;  %781 = vadd.xlane.f32.xlu1 %v780_v28  ;;  %796 = vadd.xlane.f32.xlu0 %v795_v60 }
 0x3a5   :  { %v792_v40 = vsel %vm680_vm2, %v3863_v21, 0.0 }
 0x3a6   :  { %v3865_v61 = vpop.eup %3156 }
 0x3a7   :  { %v713_v30 = vpop.xlane.xlu0 %712  ;;  %v789_v42 = vsel %vm680_vm2, %v3865_v61, 0.0  ;;  %v3872_v43 = vpop.eup %3158 }
 0x3a8   :  { %v739_v35 = vsub.f32 %v3801_v37, %v713_v30  ;;  %793 = vadd.xlane.f32.xlu1 %v792_v40  ;;  %790 = vadd.xlane.f32.xlu0 %v789_v42  ;;  %v798_v37 = vsel %vm680_vm2, %v3872_v43, 0.0 }
 0x3a9   :  { %v716_v45 = vpop.xlane.xlu1 %715 }
 0x3aa   :  { %v765_v46 = vmul.f32 1.442695, %v739_v35  ;;  %v740_v47 = vsub.f32 %v3807_v12, %v716_v45 }
 0x3ab   :  { %v707_v56 = vpop.xlane.xlu0 %706 }
 0x3ac   :  { %3160 = vpow2.f32 %v765_v46  ;;  %v737_v62 = vsub.f32 %v3803_v6, %v707_v56  ;;  %v767_v48 = vmul.f32 1.442695, %v740_v47  ;;  %799 = vadd.xlane.f32.xlu0 %v798_v37 }
 0x3ad   :  { %v710_v50 = vpop.xlane.xlu1 %709 }
 0x3ae   :  { %v761_v49 = vmul.f32 1.442695, %v737_v62  ;;  %v738_v51 = vsub.f32 %v3809_v29, %v710_v50 }
 0x3af   :  { %v725_v57 = vpop.xlane.xlu0 %724 }
 0x3b0   :  { %3162 = vpow2.f32 %v761_v49  ;;  %v763_v63 = vmul.f32 1.442695, %v738_v51  ;;  %v743_v17 = vsub.f32 %v3817_v2, %v725_v57 }
 0x3b1   :  { %3164 = vpow2.f32 %v767_v48  ;;  %v728_v52 = vpop.xlane.xlu1 %727 }
 0x3b2   :  { %3166 = vpow2.f32 %v763_v63  ;;  %v773_v55 = vmul.f32 1.442695, %v743_v17  ;;  %v744_v36 = vsub.f32 %v3823_v38, %v728_v52 }
 0x3b3   :  { %v719_v59 = vpop.xlane.xlu0 %718 }
 0x3b4   :  { %v741_v15 = vsub.f32 %v3819_v13, %v719_v59  ;;  %3168 = vpow2.f32 %v773_v55  ;;  %v775_v4 = vmul.f32 1.442695, %v744_v36 }
 0x3b5   :  { %v722_v1 = vpop.xlane.xlu1 %721 }
 0x3b6   :  { %v3879_v8 = vpop.eup %3160  ;;  %v742_v33 = vsub.f32 %v3825_v39, %v722_v1  ;;  %v769_v25 = vmul.f32 1.442695, %v741_v15 }
 0x3b7   :  { %v807_v12 = vsel %vm680_vm2, %v3879_v8, 0.0  ;;  %v1052_v40 = vpop.permute.xlu0 %1051 }
 0x3b8   :  { %808 = vadd.xlane.f32.xlu1 %v807_v12  ;;  %v771_v18 = vmul.f32 1.442695, %v742_v33 }
 0x3b9   :  { %v3937_v45 = vpop.permute.xlu1 %1053 }
 0x3ba   :  { %v3883_v6 = vpop.eup %3162  ;;  %3170 = vpow2.f32 %v771_v18 }
 0x3bb   :  { %v3885_v53 = vpop.eup %3164  ;;  %v801_v3 = vsel %vm680_vm2, %v3883_v6, 0.0  ;;  %3172 = vpow2.f32 %v769_v25 }
 0x3bc   :  { %v3889_v54 = vpop.eup %3166  ;;  %802 = vadd.xlane.f32.xlu1 %v801_v3  ;;  %v810_v7 = vsel %vm680_vm2, %v3885_v53, 0.0  ;;  %3174 = vpow2.f32 %v775_v4 }
 0x3bd   :  { %v804_v29 = vsel %vm680_vm2, %v3889_v54, 0.0 }
 0x3be   :  { %805 = vadd.xlane.f32.xlu0 %v804_v29  ;;  %v3903_v28 = vpop.eup %3168 }
 0x3bf   :  { %v819_v2 = vsel %vm680_vm2, %v3903_v28, 0.0 }
 0x3c0   :  { %811 = vadd.xlane.f32.xlu1 %v810_v7 }
 0x3c4   :  { %v3905_v60 = vpop.eup %3170 }
 0x3c5   :  { %v3909_v39 = vpop.eup %3172  ;;  %v816_v13 = vsel %vm680_vm2, %v3905_v60, 0.0 }
 0x3c6   :  { %v813_v38 = vsel %vm680_vm2, %v3909_v39, 0.0  ;;  %v3915_v30 = vpop.eup %3174 }
 0x3c7   :  { %v822_v35 = vsel %vm680_vm2, %v3915_v30, 0.0 }
 0x3d1   :  { %1055 = vrot.lane.b32.xlu1 %v3695_v24, %s3359_s5 }
 0x3d4   :  { %1168 = vrot.lane.b32.xlu0 %v3713_v34, %s3358_s30 }
 0x3f3   :  { %820 = vadd.xlane.f32.xlu0 %v819_v2 }
 0x3f5   :  { %817 = vadd.xlane.f32.xlu1 %v816_v13 }
 0x3f7   :  { %814 = vadd.xlane.f32.xlu0 %v813_v38 }
 0x3fb   :  { %823 = vadd.xlane.f32.xlu0 %v822_v35 }
 0x406   :  { %1170 = vrot.lane.b32.xlu1 %v3711_v31, %s3358_s30 }
 0x40a   :  { %1158 = vrot.lane.b32.xlu1 %v3701_v0, %s3359_s5 }
 0x40e   :  { %1162 = vrot.lane.b32.xlu1 %v3711_v31, %s3359_s5 }
 0x411   :  { %1057 = vrot.lane.b32.xlu0 %v3693_v23, %s3359_s5 }
 0x412   :  { %1447 = vrot.lane.b32.xlu1 %v3683_v32, %s3360_s6 }
 0x415   :  { %1156 = vrot.lane.b32.xlu0 %v3703_v20, %s3359_s5 }
 0x419   :  { %1160 = vrot.lane.b32.xlu0 %v3713_v34, %s3359_s5 }
 0x41d   :  { %1445 = vrot.lane.b32.xlu0 %v3685_v58, %s3360_s6 }
 0x421   :  { %1449 = vrot.lane.b32.xlu0 %v3695_v24, %s3360_s6 }
 0x425   :  { %v785_v42 = vpop.xlane.xlu0 %784 }
 0x429   :  { %v779_v46 = vpop.xlane.xlu0 %778 }
 0x42d   :  { %v788_v47 = vpop.xlane.xlu1 %787 }
 0x42e   :  { %3176 = vrcp.f32 %v788_v47 }
 0x42f   :  { %3178 = vrcp.f32 %v779_v46 }
 0x430   :  { %3180 = vrcp.f32 %v785_v42 }
 0x431   :  { %v782_v32 = vpop.xlane.xlu1 %781  ;;  %v797_v56 = vpop.xlane.xlu0 %796 }
 0x432   :  { %3182 = vrcp.f32 %v782_v32 }
 0x435   :  { %v794_v62 = vpop.xlane.xlu1 %793  ;;  %v791_v37 = vpop.xlane.xlu0 %790 }
 0x436   :  { %3184 = vrcp.f32 %v794_v62 }
 0x437   :  { %3186 = vrcp.f32 %v791_v37 }
 0x438   :  { %3188 = vrcp.f32 %v797_v56  ;;  %v3177_v58 = vpop.eup %3176 }
 0x439   :  { %v800_v48 = vpop.xlane.xlu0 %799  ;;  %v3179_v24 = vpop.eup %3178  ;;  %v844_v51 = vmul.f32 %v3177_v58, %v3851_v26  ;;  %v1080_v26 = vsel %vm489_vm1, %v3761_v9, 0  ;;  %v1083_v9 = vsel %vm489_vm1, %v3767_v14, 0 }
 0x43a   :  { %3190 = vrcp.f32 %v800_v48  ;;  %v3181_v50 = vpop.eup %3180  ;;  %v841_v63 = vmul.f32 %v3179_v24, %v3847_v22 }
 0x43b   :  { %v843_v3 = vmul.f32 %v3181_v50, %v3840_v11 }
 0x43c   :  { %v3183_v49 = vpop.eup %3182 }
 0x43d   :  { %v842_v12 = vmul.f32 %v3183_v49, %v3855_v27  ;;  %v858_v52 = vpack.c.bf16 %v844_v51, %v843_v3 }
 0x43f   :  { %v857_v29 = vpack.c.bf16 %v842_v12, %v841_v63 }
 0x440   :  { %v3185_v7 = vpop.eup %3184 }
 0x441   :  { %v3187_v57 = vpop.eup %3186  ;;  %2904 = vmatprep.mubr.msk.bf16.mxu1 %vm680_vm2, %v857_v29  ;;  %v846_v1 = vmul.f32 %v3185_v7, %v3863_v21 }
 0x442   :  { %v3189_v17 = vpop.eup %3188  ;;  %2905 = vmatmul.mubr.msk.bf16.vlgmr.msra.gmra.mrb[8].mxu1 %vm680_vm2, %v858_v52  ;;  %v845_v22 = vmul.f32 %v3187_v57, %v3865_v61 }
 0x443   :  { %2929 = vmatpush3.bf16.xpose.msra.mxu1 %v1080_v26  ;;  %v847_v33 = vmul.f32 %v3189_v17, %v3857_v19 }
 0x444   :  { %v3191_v27 = vpop.eup %3190  ;;  %3093 = vmatprep.subr.msk.bf16.mxu1 %vm489_vm1, %v3767_v14  ;;  %v859_v59 = vpack.c.bf16 %v846_v1, %v845_v22 }
 0x445   :  { %v809_v11 = vpop.xlane.xlu1 %808  ;;  %v848_v55 = vmul.f32 %v3191_v27, %v3872_v43  ;;  %v1086_v43 = vsel %vm489_vm1, %v3837_v44, 0 }
 0x446   :  { %2908 = vmatprep.mubr.msk.bf16.mxu1 %vm680_vm2, %v859_v59 }
 0x447   :  { %v860_v21 = vpack.c.bf16 %v848_v55, %v847_v33 }
 0x449   :  { %v803_v15 = vpop.xlane.xlu1 %802 }
 0x44a   :  { %3192 = vrcp.f32 %v803_v15  ;;  %2909 = vmatmul.mubr.msk.bf16.gmra.mrb[12].mxu1 %vm680_vm2, %v860_v21 }
 0x44b   :  { %3194 = vrcp.f32 %v809_v11  ;;  %v806_v61 = vpop.xlane.xlu0 %805  ;;  %2931 = vmatpush3.bf16.xpose.msra.mxu1 %v1083_v9  ;;  %2936 = vmatprep.mubr.msk.bf16.mxu1 %vm489_vm1, %v1052_v40 }
 0x44c   :  { %3196 = vrcp.f32 %v806_v61  ;;  %3094 = vmatprep.subr.msk.bf16.mxu1 %vm489_vm1, %v3837_v44  ;;  %v1089_v44 = vsel %vm489_vm1, %v3775_v10, 0 }
 0x44d   :  { %v812_v19 = vpop.xlane.xlu1 %811 }
 0x44e   :  { %3198 = vrcp.f32 %v812_v19 }
 0x453   :  { %2933 = vmatpush3.bf16.xpose.msra.mxu1 %v1086_v43 }
 0x454   :  { %v3193_v18 = vpop.eup %3192  ;;  %3095 = vmatprep.subr.msk.bf16.mxu1 %vm489_vm1, %v3775_v10  ;;  %v1188_v10 = vsel %vm489_vm1, %v3777_v16, 0 }
 0x455   :  { %v3195_v36 = vpop.eup %3194  ;;  %v849_v25 = vmul.f32 %v3193_v18, %v3883_v6  ;;  %v1185_v6 = vsel %vm489_vm1, %v3771_v5, 0 }
 0x456   :  { %v3197_v14 = vpop.eup %3196  ;;  %v851_v13 = vmul.f32 %v3195_v36, %v3879_v8  ;;  %v1056_v8 = vpop.permute.xlu1 %1055 }
 0x457   :  { %v850_v4 = vmul.f32 %v3197_v14, %v3889_v54 }
 0x458   :  { %v3199_v2 = vpop.eup %3198 }
 0x459   :  { %v852_v38 = vmul.f32 %v3199_v2, %v3885_v53  ;;  %v861_v35 = vpack.c.bf16 %v850_v4, %v849_v25  ;;  %v1169_v53 = vpop.permute.xlu0 %1168 }
 0x45a   :  { %v1191_v54 = vsel %vm489_vm1, %v1169_v53, 0 }
 0x45b   :  { %v862_v40 = vpack.c.bf16 %v852_v38, %v851_v13  ;;  %2920 = vmatprep.mubr.msk.bf16.mxu0 %vm680_vm2, %v861_v35  ;;  %2935 = vmatpush3.bf16.xpose.msra.mxu1 %v1089_v44 }
 0x45d   :  { %2921 = vmatmul.mubr.msk.bf16.vlgmr.msra.gmra.mrb[24].mxu0 %vm680_vm2, %v862_v40 }
 0x45e   :  { %2945 = vmatpush3.bf16.xpose.msra.mxu0 %v1185_v6 }
 0x45f   :  { %3097 = vmatprep.subr.msk.bf16.mxu0 %vm489_vm1, %v3777_v16 }
 0x462   :  { %2937 = vmatmul.mubr.msk.bf16.vlgmr.msra.gmra.mrb[16].mxu1 %vm489_vm1, %v3937_v45 }
 0x463   :  { %2940 = vmatprep.mubr.msk.bf16.mxu1 %vm489_vm1, %v1056_v8 }
 0x466   :  { %2947 = vmatpush3.bf16.xpose.msra.mxu0 %v1188_v10 }
 0x467   :  { %3098 = vmatprep.subr.msk.bf16.mxu0 %vm489_vm1, %v1169_v53 }
 0x46e   :  { %2949 = vmatpush3.bf16.xpose.msra.mxu0 %v1191_v54 }
 0x480   :  { %v821_v5 = vpop.xlane.xlu0 %820 }
 0x482   :  { %v818_v42 = vpop.xlane.xlu1 %817 }
 0x483   :  { %3200 = vrcp.f32 %v818_v42 }
 0x484   :  { %v815_v46 = vpop.xlane.xlu0 %814 }
 0x485   :  { %3202 = vrcp.f32 %v815_v46 }
 0x486   :  { %v1171_v47 = vpop.permute.xlu1 %1170  ;;  %3204 = vrcp.f32 %v821_v5 }
 0x487   :  { %v1194_v45 = vsel %vm489_vm1, %v1171_v47, 0  ;;  %3099 = vmatprep.subr.msk.bf16.mxu0 %vm489_vm1, %v1171_v47 }
 0x488   :  { %2951 = vmatpush3.bf16.xpose.msra.mxu0 %v1194_v45  ;;  %v824_v16 = vpop.xlane.xlu0 %823 }
 0x489   :  { %3206 = vrcp.f32 %v824_v16 }
 0x48a   :  { %v1159_v62 = vpop.permute.xlu1 %1158 }
 0x48c   :  { %v1058_v32 = vpop.permute.xlu0 %1057 }
 0x48d   :  { %v3201_v56 = vpop.eup %3200  ;;  %2941 = vmatmul.mubr.msk.bf16.gmra.mrb[20].mxu1 %vm489_vm1, %v1058_v32 }
 0x48e   :  { %v854_v24 = vmul.f32 %v3201_v56, %v3905_v60  ;;  %v1163_v63 = vpop.permute.xlu1 %1162 }
 0x48f   :  { %v3203_v37 = vpop.eup %3202 }
 0x490   :  { %v1157_v58 = vpop.permute.xlu0 %1156  ;;  %v853_v48 = vmul.f32 %v3203_v37, %v3909_v39  ;;  %v3205_v50 = vpop.eup %3204 }
 0x491   :  { %v855_v3 = vmul.f32 %v3205_v50, %v3903_v28 }
 0x492   :  { %v863_v49 = vpack.c.bf16 %v854_v24, %v853_v48  ;;  %v1448_v39 = vpop.permute.xlu1 %1447 }
 0x493   :  { %v3207_v51 = vpop.eup %3206 }
 0x494   :  { %2924 = vmatprep.mubr.msk.bf16.mxu0 %vm680_vm2, %v863_v49  ;;  %v1161_v12 = vpop.permute.xlu0 %1160  ;;  %v856_v29 = vmul.f32 %v3207_v51, %v3915_v30 }
 0x496   :  { %v864_v7 = vpack.c.bf16 %v856_v29, %v855_v3 }
 0x498   :  { %2925 = vmatmul.mubr.msk.bf16.gmra.mrb[28].mxu0 %vm680_vm2, %v864_v7  ;;  %v1446_v52 = vpop.permute.xlu0 %1445 }
 0x499   :  { %2952 = vmatprep.mubr.msk.bf16.mxu0 %vm489_vm1, %v1157_v58  ;;  %2960 = vmatprep.subr.bf16.mxu1 %v1446_v52 }
 0x49a   :  { %2961 = vmatpush3.bf16.msra.mxu1 %v1446_v52 }
 0x49b   :  { %2962 = vmatprep.subr.bf16.mxu1 %v1448_v39 }
 0x49c   :  { %v1450_v60 = vpop.permute.xlu0 %1449 }
 0x49e   :  { %2963 = vmatpush3.bf16.msra.mxu1 %v1448_v39 }
 0x49f   :  { %2964 = vmatprep.subr.bf16.mxu1 %v1450_v60 }
 0x4a0   :  { %2953 = vmatmul.mubr.msk.bf16.vlgmr.msra.gmra.mrb[32].mxu0 %vm489_vm1, %v1159_v62 }
 0x4a1   :  { %2956 = vmatprep.mubr.msk.bf16.mxu0 %vm489_vm1, %v1161_v12 }
 0x4a2   :  { %2965 = vmatpush3.bf16.msra.mxu1 %v1450_v60 }
 0x4a8   :  { %2957 = vmatmul.mubr.msk.bf16.gmra.mrb[36].mxu0 %vm489_vm1, %v1163_v63 }
 0x515   :  { %v3996_v28 = vpop.f32.mrb[8].mxu1 }
 0x516   :  { %v3998_v30 = vpop.f32.mrb[9].mxu1 }
 0x517   :  { %v4000_v57 = vpop.f32.mrb[10].mxu1 }
 0x518   :  { %v1044_v1 = vpack.c.bf16 %v4000_v57, %v3996_v28  ;;  %v4004_v17 = vpop.f32.mrb[11].mxu1  ;;  %v1881_v28 = vsub.s32 4, %v3561_v41 }
 0x519   :  { %v1043_v26 = vpack.c.bf16 %v4004_v17, %v3998_v30  ;;  %v4264_v30 = vld [vmem:[%s4784_s2] sm:$0xff] }
 0x51a   :  { %v4267_v57 = vrot.slane %v4264_v30, %v1881_v28 }
 0x51d   :  { %v4008_v22 = vpop.f32.mrb[12].mxu1 }
 0x51e   :  { %v4010_v27 = vpop.f32.mrb[13].mxu1 }
 0x51f   :  { %v4012_v11 = vpop.f32.mrb[14].mxu1 }
 0x520   :  { %v1046_v59 = vpack.c.bf16 %v4012_v11, %v4008_v22  ;;  %v4016_v33 = vpop.f32.mrb[15].mxu1  ;;  %v3339_v11 = vld [vmem:[%s4782_s0 + $0x10] sm:$0xff] }
 0x521   :  { %v1045_v55 = vpack.c.bf16 %v4016_v33, %v4010_v27 }
 0x530   :  { %v4020_v21 = vpop.f32.mrb[24].mxu0 }
 0x531   :  { %v4022_v15 = vpop.f32.mrb[25].mxu0 }
 0x532   :  { %v4024_v9 = vpop.f32.mrb[26].mxu0 }
 0x533   :  { %v1048_v61 = vpack.c.bf16 %v4024_v9, %v4020_v21  ;;  %v4028_v19 = vpop.f32.mrb[27].mxu0 }
 0x534   :  { %v1047_v43 = vpack.c.bf16 %v4028_v19, %v4022_v15  ;;  %v3340_v15 = vld [vmem:[%s4782_s0] sm:$0xff] }
 0x535   :  { %v2938_v18 = vpop.f32.mrb[16].mxu1 }
 0x536   :  { %v1125_v36 = vpop.f32.mrb[17].mxu1  ;;  %v1267_v14 = vsel %vm680_vm2, %v2938_v18, -inf }
 0x537   :  { %1268 = vmax.xlane.f32.xlu0 %v1267_v14  ;;  %v4033_v25 = vpop.f32.mrb[18].mxu1  ;;  %v1261_v13 = vsel %vm680_vm2, %v1125_v36, -inf }
 0x538   :  { %v4035_v4 = vpop.f32.mrb[19].mxu1  ;;  %v1270_v38 = vsel %vm680_vm2, %v4033_v25, -inf }
 0x539   :  { %v1264_v2 = vsel %vm680_vm2, %v4035_v4, -inf }
 0x53a   :  { %1265 = vmax.xlane.f32.xlu1 %v1264_v2 }
 0x53b   :  { %1262 = vmax.xlane.f32.xlu0 %v1261_v13 }
 0x53f   :  { %1271 = vmax.xlane.f32.xlu0 %v1270_v38 }
 0x560   :  { %v4042_v35 = vpop.f32.mrb[20].mxu1 }
 0x561   :  { %v4044_v40 = vpop.f32.mrb[21].mxu1  ;;  %v1279_v44 = vsel %vm680_vm2, %v4042_v35, -inf }
 0x562   :  { %1280 = vmax.xlane.f32.xlu0 %v1279_v44  ;;  %v4048_v6 = vpop.f32.mrb[22].mxu1  ;;  %v1273_v53 = vsel %vm680_vm2, %v4044_v40, -inf }
 0x563   :  { %v4050_v8 = vpop.f32.mrb[23].mxu1  ;;  %v1282_v10 = vsel %vm680_vm2, %v4048_v6, -inf }
 0x564   :  { %1283 = vmax.xlane.f32.xlu1 %v1282_v10  ;;  %v1276_v54 = vsel %vm680_vm2, %v4050_v8, -inf }
 0x566   :  { %1274 = vmax.xlane.f32.xlu0 %v1273_v53 }
 0x568   :  { %1277 = vmax.xlane.f32.xlu1 %v1276_v54 }
 0x56b   :  { %v4058_v5 = vpop.f32.mrb[28].mxu0 }
 0x56c   :  { %v4060_v42 = vpop.f32.mrb[29].mxu0 }
 0x56d   :  { %v4062_v46 = vpop.f32.mrb[30].mxu0 }
 0x56e   :  { %v1050_v47 = vpack.c.bf16 %v4062_v46, %v4058_v5  ;;  %v4066_v45 = vpop.f32.mrb[31].mxu0  ;;  %v3342_v5 = vld [vmem:[%s4782_s0 + $0x8] sm:$0xff] }
 0x56f   :  { %v1049_v16 = vpack.c.bf16 %v4066_v45, %v4060_v42 }
 0x573   :  { %v4070_v32 = vpop.f32.mrb[32].mxu0 }
 0x574   :  { %v4072_v56 = vpop.f32.mrb[33].mxu0  ;;  %v1291_v62 = vsel %vm680_vm2, %v4070_v32, -inf }
 0x575   :  { %1292 = vmax.xlane.f32.xlu0 %v1291_v62  ;;  %v4076_v37 = vpop.f32.mrb[34].mxu0  ;;  %v1285_v24 = vsel %vm680_vm2, %v4072_v56, -inf }
 0x576   :  { %v4078_v58 = vpop.f32.mrb[35].mxu0  ;;  %v1294_v48 = vsel %vm680_vm2, %v4076_v37, -inf }
 0x577   :  { %1295 = vmax.xlane.f32.xlu1 %v1294_v48  ;;  %v1288_v50 = vsel %vm680_vm2, %v4078_v58, -inf }
 0x579   :  { %1286 = vmax.xlane.f32.xlu0 %v1285_v24 }
 0x57b   :  { %1289 = vmax.xlane.f32.xlu1 %v1288_v50  ;;  %v4086_v49 = vpop.f32.mrb[36].mxu0 }
 0x57c   :  { %v4088_v51 = vpop.f32.mrb[37].mxu0  ;;  %v1303_v63 = vsel %vm680_vm2, %v4086_v49, -inf }
 0x57d   :  { %1304 = vmax.xlane.f32.xlu0 %v1303_v63  ;;  %v4092_v12 = vpop.f32.mrb[38].mxu0  ;;  %v1297_v29 = vsel %vm680_vm2, %v4088_v51, -inf }
 0x57e   :  { %v4094_v3 = vpop.f32.mrb[39].mxu0  ;;  %v1306_v7 = vsel %vm680_vm2, %v4092_v12, -inf }
 0x57f   :  { %v1300_v52 = vsel %vm680_vm2, %v4094_v3, -inf }
 0x581   :  { %1298 = vmax.xlane.f32.xlu0 %v1297_v29 }
 0x58c   :  { %1534 = vrot.lane.b32.xlu1 %v3703_v20, %s3360_s6 }
 0x597   :  { %1451 = vrot.lane.b32.xlu0 %v3693_v23, %s3360_s6 }
 0x5b0   :  { %1307 = vmax.xlane.f32.xlu1 %v1306_v7 }
 0x5b4   :  { %1301 = vmax.xlane.f32.xlu1 %v1300_v52 }
 0x5c4   :  { %v1269_v39 = vpop.xlane.xlu0 %1268 }
 0x5c5   :  { %1536 = vrot.lane.b32.xlu1 %v3701_v0, %s3360_s6  ;;  %v1311_v60 = vsub.f32 %v2938_v18, %v1269_v39 }
 0x5c7   :  { %v1329_v14 = vmul.f32 1.442695, %v1311_v60  ;;  %v1266_v10 = vpop.xlane.xlu1 %1265 }
 0x5c8   :  { %v1263_v2 = vpop.xlane.xlu0 %1262  ;;  %v1310_v54 = vsub.f32 %v4035_v4, %v1266_v10 }
 0x5c9   :  { %3208 = vpow2.f32 %v1329_v14  ;;  %v1309_v20 = vsub.f32 %v1125_v36, %v1263_v2 }
 0x5ca   :  { %v1327_v62 = vmul.f32 1.442695, %v1310_v54 }
 0x5cb   :  { %v1325_v13 = vmul.f32 1.442695, %v1309_v20 }
 0x5cc   :  { %v1272_v23 = vpop.xlane.xlu0 %1271 }
 0x5cd   :  { %3210 = vpow2.f32 %v1325_v13  ;;  %v1312_v38 = vsub.f32 %v4033_v25, %v1272_v23 }
 0x5cf   :  { %v1331_v0 = vmul.f32 1.442695, %v1312_v38 }
 0x5d1   :  { %3212 = vpow2.f32 %v1331_v0 }
 0x5d2   :  { %3214 = vpow2.f32 %v1327_v62 }
 0x5d3   :  { %v4109_v44 = vpop.eup %3208 }
 0x5d4   :  { %v1363_v53 = vsel %vm680_vm2, %v4109_v44, 0.0 }
 0x5d5   :  { %1364 = vadd.xlane.f32.xlu0 %v1363_v53 }
 0x5d7   :  { %v4114_v18 = vpop.eup %3210 }
 0x5d8   :  { %v1357_v36 = vsel %vm680_vm2, %v4114_v18, 0.0 }
 0x5d9   :  { %1358 = vadd.xlane.f32.xlu0 %v1357_v36 }
 0x5db   :  { %v4118_v25 = vpop.eup %3212 }
 0x5dc   :  { %v1366_v48 = vsel %vm680_vm2, %v4118_v25, 0.0  ;;  %v4122_v24 = vpop.eup %3214 }
 0x5dd   :  { %v1360_v4 = vsel %vm680_vm2, %v4122_v24, 0.0 }
 0x5e9   :  { %1367 = vadd.xlane.f32.xlu1 %v1366_v48 }
 0x5ed   :  { %1361 = vadd.xlane.f32.xlu1 %v1360_v4 }
 0x5ef   :  { %v1281_v50 = vpop.xlane.xlu0 %1280 }
 0x5f0   :  { %v1315_v63 = vsub.f32 %v4042_v35, %v1281_v50 }
 0x5f1   :  { %v1284_v29 = vpop.xlane.xlu1 %1283 }
 0x5f2   :  { %v1337_v7 = vmul.f32 1.442695, %v1315_v63  ;;  %v1316_v52 = vsub.f32 %v4048_v6, %v1284_v29 }
 0x5f3   :  { %v1275_v39 = vpop.xlane.xlu0 %1274 }
 0x5f4   :  { %3216 = vpow2.f32 %v1337_v7  ;;  %v1339_v60 = vmul.f32 1.442695, %v1316_v52  ;;  %v1313_v14 = vsub.f32 %v4044_v40, %v1275_v39 }
 0x5f5   :  { %v1278_v2 = vpop.xlane.xlu1 %1277 }
 0x5f6   :  { %3218 = vpow2.f32 %v1339_v60  ;;  %v1333_v20 = vmul.f32 1.442695, %v1313_v14  ;;  %v1314_v13 = vsub.f32 %v4050_v8, %v1278_v2 }
 0x5f8   :  { %3220 = vpow2.f32 %v1333_v20  ;;  %v1335_v23 = vmul.f32 1.442695, %v1314_v13 }
 0x5fa   :  { %3222 = vpow2.f32 %v1335_v23 }
 0x5fe   :  { %v4130_v38 = vpop.eup %3216 }
 0x5ff   :  { %v1375_v35 = vsel %vm680_vm2, %v4130_v38, 0.0 }
 0x600   :  { %v4134_v10 = vpop.eup %3218  ;;  %1376 = vadd.xlane.f32.xlu0 %v1375_v35 }
 0x601   :  { %v1378_v6 = vsel %vm680_vm2, %v4134_v10, 0.0 }
 0x602   :  { %v4138_v40 = vpop.eup %3220  ;;  %1379 = vadd.xlane.f32.xlu1 %v1378_v6  ;;  %v1293_v53 = vpop.xlane.xlu0 %1292 }
 0x603   :  { %v1319_v8 = vsub.f32 %v4070_v32, %v1293_v53  ;;  %v1369_v54 = vsel %vm680_vm2, %v4138_v40, 0.0 }
 0x604   :  { %v4143_v0 = vpop.eup %3222  ;;  %v1296_v36 = vpop.xlane.xlu1 %1295  ;;  %1370 = vadd.xlane.f32.xlu0 %v1369_v54 }
 0x605   :  { %v1345_v62 = vmul.f32 1.442695, %v1319_v8  ;;  %v1320_v48 = vsub.f32 %v4076_v37, %v1296_v36  ;;  %v1372_v4 = vsel %vm680_vm2, %v4143_v0, 0.0 }
 0x606   :  { %1373 = vadd.xlane.f32.xlu1 %v1372_v4  ;;  %v1287_v50 = vpop.xlane.xlu0 %1286 }
 0x607   :  { %3224 = vpow2.f32 %v1345_v62  ;;  %v1317_v63 = vsub.f32 %v4072_v56, %v1287_v50  ;;  %v1347_v32 = vmul.f32 1.442695, %v1320_v48 }
 0x608   :  { %v1290_v29 = vpop.xlane.xlu1 %1289 }
 0x609   :  { %v1341_v7 = vmul.f32 1.442695, %v1317_v63  ;;  %v1318_v52 = vsub.f32 %v4078_v58, %v1290_v29 }
 0x60a   :  { %v1305_v39 = vpop.xlane.xlu0 %1304 }
 0x60b   :  { %3226 = vpow2.f32 %v1341_v7  ;;  %v1323_v60 = vsub.f32 %v4086_v49, %v1305_v39  ;;  %v1343_v37 = vmul.f32 1.442695, %v1318_v52 }
 0x60c   :  { %v1535_v14 = vpop.permute.xlu1 %1534  ;;  %3228 = vpow2.f32 %v1347_v32 }
 0x60d   :  { %v1353_v2 = vmul.f32 1.442695, %v1323_v60  ;;  %2976 = vmatprep.subr.bf16.mxu0 %v1535_v14 }
 0x60e   :  { %2977 = vmatpush3.bf16.msra.mxu0 %v1535_v14  ;;  %v1299_v20 = vpop.xlane.xlu0 %1298 }
 0x60f   :  { %3230 = vpow2.f32 %v1353_v2  ;;  %v1321_v13 = vsub.f32 %v4088_v51, %v1299_v20  ;;  %v3337_v2 = vld [vmem:[%s4783_s1] ss:$8 sps:$4 sm:$0xff]  }
 0x610   :  { %3232 = vpow2.f32 %v1343_v37 }
 0x611   :  { %v4152_v56 = vpop.eup %3224  ;;  %v1349_v23 = vmul.f32 1.442695, %v1321_v13 }
 0x612   :  { %v1452_v35 = vpop.permute.xlu0 %1451  ;;  %v1387_v58 = vsel %vm680_vm2, %v4152_v56, 0.0 }
 0x613   :  { %3234 = vpow2.f32 %v1349_v23  ;;  %1388 = vadd.xlane.f32.xlu1 %v1387_v58  ;;  %2966 = vmatprep.subr.bf16.mxu1 %v1452_v35 }
 0x614   :  { %2967 = vmatpush3.bf16.msra.mxu1 %v1452_v35 }
 0x615   :  { %v4156_v49 = vpop.eup %3226 }
 0x616   :  { %v1381_v6 = vsel %vm680_vm2, %v4156_v49, 0.0  ;;  %v4160_v53 = vpop.eup %3228 }
 0x617   :  { %1382 = vadd.xlane.f32.xlu1 %v1381_v6  ;;  %v1390_v8 = vsel %vm680_vm2, %v4160_v53, 0.0 }
 0x619   :  { %v4162_v51 = vpop.eup %3230 }
 0x61a   :  { %v1399_v54 = vsel %vm680_vm2, %v4162_v51, 0.0  ;;  %v4168_v36 = vpop.eup %3232 }
 0x61b   :  { %1391 = vadd.xlane.f32.xlu1 %v1390_v8  ;;  %1400 = vadd.xlane.f32.xlu0 %v1399_v54  ;;  %v1384_v48 = vsel %vm680_vm2, %v4168_v36, 0.0 }
 0x61d   :  { %v4170_v62 = vpop.eup %3234 }
 0x61e   :  { %v1393_v4 = vsel %vm680_vm2, %v4170_v62, 0.0 }
 0x61f   :  { %1385 = vadd.xlane.f32.xlu1 %v1384_v48  ;;  %1394 = vadd.xlane.f32.xlu0 %v1393_v4 }
 0x63d   :  { %v1308_v50 = vpop.xlane.xlu1 %1307 }
 0x63e   :  { %v1324_v63 = vsub.f32 %v4092_v12, %v1308_v50 }
 0x640   :  { %v1355_v29 = vmul.f32 1.442695, %v1324_v63 }
 0x641   :  { %v1302_v32 = vpop.xlane.xlu1 %1301 }
 0x642   :  { %3236 = vpow2.f32 %v1355_v29  ;;  %v1322_v7 = vsub.f32 %v4094_v3, %v1302_v32  ;;  %v3336_v3 = vld [vmem:[%s4783_s1 + $0x10] ss:$8 sps:$4 sm:$0xff]  }
 0x644   :  { %v1351_v52 = vmul.f32 1.442695, %v1322_v7 }
 0x645   :  { %v1537_v39 = vpop.permute.xlu1 %1536 }
 0x646   :  { %3238 = vpow2.f32 %v1351_v52  ;;  %2978 = vmatprep.subr.bf16.mxu0 %v1537_v39 }
 0x647   :  { %2979 = vmatpush3.bf16.msra.mxu0 %v1537_v39 }
 0x64c   :  { %v4178_v60 = vpop.eup %3236 }
 0x64d   :  { %v1402_v14 = vsel %vm680_vm2, %v4178_v60, 0.0 }
 0x64e   :  { %1403 = vadd.xlane.f32.xlu0 %v1402_v14 }
 0x650   :  { %v4182_v37 = vpop.eup %3238 }
 0x651   :  { %v1396_v12 = vsel %vm680_vm2, %v4182_v37, 0.0 }
 0x652   :  { %1397 = vadd.xlane.f32.xlu1 %v1396_v12 }
 0x662   :  { %v1365_v20 = vpop.xlane.xlu0 %1364 }
 0x663   :  { %1540 = vrot.lane.b32.xlu1 %v3711_v31, %s3360_s6 }
 0x664   :  { %1538 = vrot.lane.b32.xlu0 %v3713_v34, %s3360_s6 }
 0x666   :  { %v1359_v13 = vpop.xlane.xlu0 %1358 }
 0x667   :  { %1755 = vrot.lane.b32.xlu1 %v3337_v2, %s3361_s9 }
 0x668   :  { %1631 = vrot.lane.b32.xlu0 %v3336_v3, %s3361_s9 }
 0x676   :  { %v1368_v23 = vpop.xlane.xlu1 %1367 }
 0x677   :  { %3240 = vrcp.f32 %v1368_v23 }
 0x678   :  { %3242 = vrcp.f32 %v1359_v13 }
 0x679   :  { %3244 = vrcp.f32 %v1365_v20 }
 0x67a   :  { %v1362_v31 = vpop.xlane.xlu1 %1361 }
 0x67b   :  { %3246 = vrcp.f32 %v1362_v31 }
 0x681   :  { %v3241_v34 = vpop.eup %3240 }
 0x682   :  { %v3243_v35 = vpop.eup %3242  ;;  %v1424_v8 = vmul.f32 %v3241_v34, %v4118_v25 }
 0x683   :  { %v3245_v58 = vpop.eup %3244  ;;  %v1421_v54 = vmul.f32 %v3243_v35, %v4114_v18 }
 0x684   :  { %v1423_v4 = vmul.f32 %v3245_v58, %v4109_v44 }
 0x685   :  { %v3247_v6 = vpop.eup %3246 }
 0x686   :  { %v1422_v48 = vmul.f32 %v3247_v6, %v4122_v24  ;;  %v1438_v63 = vpack.c.bf16 %v1424_v8, %v1423_v4 }
 0x688   :  { %v1437_v50 = vpack.c.bf16 %v1422_v48, %v1421_v54 }
 0x68a   :  { %2968 = vmatprep.mubr.msk.bf16.mxu1 %vm680_vm2, %v1437_v50 }
 0x68b   :  { %2969 = vmatmul.mubr.msk.bf16.vlgmr.msra.gmra.mrb[24].mxu1 %vm680_vm2, %v1438_v63 }
 0x68d   :  { %v1377_v29 = vpop.xlane.xlu0 %1376 }
 0x68f   :  { %v1380_v32 = vpop.xlane.xlu1 %1379 }
 0x690   :  { %3248 = vrcp.f32 %v1380_v32 }
 0x691   :  { %v1371_v7 = vpop.xlane.xlu0 %1370 }
 0x692   :  { %3250 = vrcp.f32 %v1371_v7 }
 0x693   :  { %3252 = vrcp.f32 %v1377_v29  ;;  %v1374_v52 = vpop.xlane.xlu1 %1373 }
 0x694   :  { %3254 = vrcp.f32 %v1374_v52 }
 0x69a   :  { %v3249_v25 = vpop.eup %3248 }
 0x69b   :  { %v1428_v44 = vmul.f32 %v3249_v25, %v4134_v10 }
 0x69c   :  { %v3251_v18 = vpop.eup %3250 }
 0x69d   :  { %v3253_v39 = vpop.eup %3252  ;;  %v1425_v14 = vmul.f32 %v3251_v18, %v4138_v40 }
 0x69e   :  { %v3255_v24 = vpop.eup %3254  ;;  %v1427_v2 = vmul.f32 %v3253_v39, %v4130_v38 }
 0x69f   :  { %v1426_v12 = vmul.f32 %v3255_v24, %v4143_v0 }
 0x6a0   :  { %v1389_v3 = vpop.xlane.xlu1 %1388  ;;  %v1440_v13 = vpack.c.bf16 %v1428_v44, %v1427_v2 }
 0x6a1   :  { %v1439_v20 = vpack.c.bf16 %v1426_v12, %v1425_v14 }
 0x6a3   :  { %2972 = vmatprep.mubr.msk.bf16.mxu1 %vm680_vm2, %v1439_v20 }
 0x6a4   :  { %v1383_v23 = vpop.xlane.xlu1 %1382  ;;  %2973 = vmatmul.mubr.msk.bf16.gmra.mrb[28].mxu1 %vm680_vm2, %v1440_v13 }
 0x6a5   :  { %3256 = vrcp.f32 %v1383_v23 }
 0x6a8   :  { %v1392_v31 = vpop.xlane.xlu1 %1391  ;;  %v1401_v38 = vpop.xlane.xlu0 %1400 }
 0x6ac   :  { %v1386_v34 = vpop.xlane.xlu1 %1385  ;;  %v1395_v6 = vpop.xlane.xlu0 %1394 }
 0x6ad   :  { %3258 = vrcp.f32 %v1386_v34 }
 0x6ae   :  { %3260 = vrcp.f32 %v1392_v31 }
 0x6af   :  { %v3257_v35 = vpop.eup %3256  ;;  %3262 = vrcp.f32 %v1389_v3 }
 0x6b0   :  { %v1429_v40 = vmul.f32 %v3257_v35, %v4156_v49 }
 0x6b7   :  { %v3259_v10 = vpop.eup %3258 }
 0x6b8   :  { %v1430_v0 = vmul.f32 %v3259_v10, %v4168_v36  ;;  %v3261_v54 = vpop.eup %3260 }
 0x6b9   :  { %v3263_v50 = vpop.eup %3262  ;;  %v1432_v49 = vmul.f32 %v3261_v54, %v4160_v53 }
 0x6ba   :  { %v1441_v58 = vpack.c.bf16 %v1430_v0, %v1429_v40  ;;  %v1431_v29 = vmul.f32 %v3263_v50, %v4152_v56 }
 0x6bc   :  { %2984 = vmatprep.mubr.msk.bf16.mxu0 %vm680_vm2, %v1441_v58  ;;  %v1442_v32 = vpack.c.bf16 %v1432_v49, %v1431_v29 }
 0x6db   :  { %v1404_v8 = vpop.xlane.xlu0 %1403 }
 0x6dc   :  { %3264 = vrcp.f32 %v1404_v8 }
 0x6dd   :  { %3266 = vrcp.f32 %v1395_v6 }
 0x6de   :  { %3268 = vrcp.f32 %v1401_v38 }
 0x6df   :  { %v1398_v48 = vpop.xlane.xlu1 %1397  ;;  %v1539_v4 = vpop.permute.xlu0 %1538 }
 0x6e0   :  { %3270 = vrcp.f32 %v1398_v48  ;;  %2980 = vmatprep.subr.bf16.mxu0 %v1539_v4 }
 0x6e1   :  { %2981 = vmatpush3.bf16.msra.mxu0 %v1539_v4 }
 0x6e3   :  { %v1541_v36 = vpop.permute.xlu1 %1540  ;;  %v1632_v63 = vpop.permute.xlu0 %1631 }
 0x6e4   :  { %2982 = vmatprep.subr.bf16.mxu0 %v1541_v36  ;;  %2992 = vmatprep.subr.bf16.mxu1 %v1632_v63 }
 0x6e5   :  { %2983 = vmatpush3.bf16.msra.mxu0 %v1541_v36  ;;  %2993 = vmatpush3.bf16.msra.mxu1 %v1632_v63 }
 0x6e6   :  { %v3265_v7 = vpop.eup %3264 }
 0x6e7   :  { %v3267_v52 = vpop.eup %3266  ;;  %v1436_v39 = vmul.f32 %v3265_v7, %v4178_v60  ;;  %v1756_v12 = vpop.permute.xlu1 %1755 }
 0x6e8   :  { %2985 = vmatmul.mubr.msk.bf16.vlgmr.msra.gmra.mrb[40].mxu0 %vm680_vm2, %v1442_v32  ;;  %v3269_v25 = vpop.eup %3268  ;;  %v1433_v24 = vmul.f32 %v3267_v52, %v4170_v62  ;;  %3010 = vmatprep.subr.bf16.mxu1 %v1756_v12 }
 0x6e9   :  { %v1435_v44 = vmul.f32 %v3269_v25, %v4162_v51 }
 0x6ea   :  { %v3271_v18 = vpop.eup %3270 }
 0x6eb   :  { %v1434_v53 = vmul.f32 %v3271_v18, %v4182_v37  ;;  %v1444_v14 = vpack.c.bf16 %v1436_v39, %v1435_v44  ;;  %v3343_v39 = vld [vmem:[%s4782_s0 + $0x38] sm:$0xff] }
 0x6ed   :  { %v1443_v56 = vpack.c.bf16 %v1434_v53, %v1433_v24 }
 0x6ef   :  { %2988 = vmatprep.mubr.msk.bf16.mxu0 %vm680_vm2, %v1443_v56 }
 0x6f0   :  { %2989 = vmatmul.mubr.msk.bf16.gmra.mrb[44].mxu0 %vm680_vm2, %v1444_v14 }
 0x75e   :  { %v2970_v3 = vpop.f32.mrb[24].mxu1 }
 0x75f   :  { %v1503_v2 = vpop.f32.mrb[25].mxu1 }
 0x760   :  { %v2971_v20 = vpop.f32.mrb[26].mxu1 }
 0x761   :  { %v1624_v13 = vpack.c.bf16 %v2971_v20, %v2970_v3  ;;  %v1506_v23 = vpop.f32.mrb[27].mxu1 }
 0x762   :  { %v1623_v60 = vpack.c.bf16 %v1506_v23, %v1503_v2  ;;  %v3344_v23 = vld [vmem:[%s4782_s0 + $0x28] sm:$0xff] }
 0x764   :  { %2994 = vmatprep.mubr.msk.bf16.mxu1 %vm489_vm1, %v1623_v60 }
 0x765   :  { %2995 = vmatmul.mubr.msk.bf16.vlgmr.msra.gmra.mrb[32].mxu1 %vm489_vm1, %v1624_v13 }
 0x766   :  { %3011 = vmatpush3.bf16.msra.mxu1 %v1756_v12 }
 0x777   :  { %v2974_v51 = vpop.f32.mrb[28].mxu1 }
 0x778   :  { %v1519_v62 = vpop.f32.mrb[29].mxu1 }
 0x779   :  { %v2975_v37 = vpop.f32.mrb[30].mxu1 }
 0x77a   :  { %v1626_v31 = vpack.c.bf16 %v2975_v37, %v2974_v51  ;;  %v1522_v34 = vpop.f32.mrb[31].mxu1 }
 0x77b   :  { %v1625_v35 = vpack.c.bf16 %v1522_v34, %v1519_v62  ;;  %v3345_v62 = vld [vmem:[%s4782_s0 + $0x30] sm:$0xff] }
 0x77d   :  { %2998 = vmatprep.mubr.msk.bf16.mxu1 %vm489_vm1, %v1625_v35 }
 0x77e   :  { %2999 = vmatmul.mubr.msk.bf16.gmra.mrb[36].mxu1 %vm489_vm1, %v1626_v31 }
 0x7bb   :  { %v2986_v10 = vpop.f32.mrb[40].mxu0 }
 0x7bc   :  { %v1592_v40 = vpop.f32.mrb[41].mxu0 }
 0x7bd   :  { %v2987_v0 = vpop.f32.mrb[42].mxu0 }
 0x7be   :  { %v1628_v58 = vpack.c.bf16 %v2987_v0, %v2986_v10  ;;  %v1595_v38 = vpop.f32.mrb[43].mxu0  ;;  %v3346_v0 = vld [vmem:[%s4782_s0 + $0x20] sm:$0xff] }
 0x7bf   :  { %v1627_v6 = vpack.c.bf16 %v1595_v38, %v1592_v40 }
 0x7c1   :  { %3002 = vmatprep.mubr.msk.bf16.mxu1 %vm489_vm1, %v1627_v6 }
 0x7c2   :  { %3003 = vmatmul.mubr.msk.bf16.gmra.mrb[40].mxu1 %vm489_vm1, %v1628_v58 }
 0x7c3   :  { %v2990_v8 = vpop.f32.mrb[44].mxu0 }
 0x7c4   :  { %v1608_v54 = vpop.f32.mrb[45].mxu0 }
 0x7c5   :  { %v2991_v48 = vpop.f32.mrb[46].mxu0 }
 0x7c6   :  { %v1630_v4 = vpack.c.bf16 %v2991_v48, %v2990_v8  ;;  %v1611_v50 = vpop.f32.mrb[47].mxu0 }
 0x7c7   :  { %v1629_v49 = vpack.c.bf16 %v1611_v50, %v1608_v54 }
 0x7c9   :  { %3006 = vmatprep.mubr.msk.bf16.mxu1 %vm489_vm1, %v1629_v49 }
 0x7ca   :  { %3007 = vmatmul.mubr.msk.bf16.gmra.mrb[44].mxu1 %vm489_vm1, %v1630_v4 }
 0x7cb   :  { %3012 = vmatprep.mubr.msk.bf16.mxu1 %vm489_vm1, %v1043_v26 }
 0x7d2   :  { %3013 = vmatmul.mubr.msk.bf16.vlgmr.msra.gmra.mrb[32].mxu1 %vm489_vm1, %v1044_v1 }
 0x7d3   :  { %3016 = vmatprep.mubr.msk.bf16.mxu1 %vm489_vm1, %v1045_v55 }
 0x7da   :  { %3017 = vmatmul.mubr.msk.bf16.gmra.mrb[36].mxu1 %vm489_vm1, %v1046_v59 }
 0x7db   :  { %3020 = vmatprep.mubr.msk.bf16.mxu1 %vm489_vm1, %v1047_v43 }
 0x7e2   :  { %3021 = vmatmul.mubr.msk.bf16.gmra.mrb[40].mxu1 %vm489_vm1, %v1048_v61  ;;  %v3341_v61 = vld [vmem:[%s4782_s0 + $0x18] sm:$0xff] }
 0x7e3   :  { %3024 = vmatprep.mubr.msk.bf16.mxu1 %vm489_vm1, %v1049_v16 }
 0x7ea   :  { %3025 = vmatmul.mubr.msk.bf16.gmra.mrb[44].mxu1 %vm489_vm1, %v1050_v47 }
 0x8a5   :  { %v3014_v1 = vpop.f32.mrb[32].mxu1 }
 0x8a6   :  { %v1885_v17 = vadd.f32 %v3014_v1, %v4267_v57  ;;  %v1816_v26 = vpop.f32.mrb[33].mxu1  ;;  %v3347_v1 = vld [vmem:[%s4782_s0 + $0x58] sm:$0xff] }
 0x8a7   :  { %v1883_v22 = vadd.f32 %v4267_v57, %v1816_v26  ;;  %v3015_v27 = vpop.f32.mrb[34].mxu1 }
 0x8a8   :  { %v4274_v59 = vadd.f32 %v3339_v11, %v1885_v17  ;;  %v1886_v33 = vadd.f32 %v3015_v27, %v4267_v57  ;;  %v1819_v55 = vpop.f32.mrb[35].mxu1 }
 0x8a9   :  { %v1884_v21 = vadd.f32 %v4267_v57, %v1819_v55  ;;  %v4281_v9 = vadd.f32 %v3340_v15, %v1883_v22  ;;  %v3348_v55 = vld [vmem:[%s4782_s0 + $0x48] sm:$0xff] }
 0x8aa   :  { %v4286_v19 = vadd.f32 %v3341_v61, %v1886_v33  ;;  %v1921_v43 = vsel %vm40_vm0, %v4274_v59, 0.0  ;;  %v1981_v18 = vmul.f32 %v4274_v59, %v4274_v59  ;;  %v3349_v61 = vld [vmem:[%s4782_s0 + $0x50] sm:$0xff] }
 0x8ab   :  { %v4293_v42 = vadd.f32 %v3342_v5, %v1884_v21  ;;  %1922 = vadd.xlane.f32.xlu0 %v1921_v43  ;;  %v1915_v36 = vsel %vm40_vm0, %v4281_v9, 0.0  ;;  %v1979_v2 = vmul.f32 %v4281_v9, %v4281_v9 }
 0x8ac   :  { %v1982_v45 = vmul.f32 %v4286_v19, %v4286_v19  ;;  %v1924_v25 = vsel %vm40_vm0, %v4286_v19, 0.0  ;;  %v2001_v3 = vsel %vm40_vm0, %v1981_v18, 0.0  ;;  %v3351_v18 = vld [vmem:[%s4782_s0 + $0x78] sm:$0xff] }
 0x8ad   :  { %v3018_v46 = vpop.f32.mrb[36].mxu1  ;;  %v1918_v47 = vsel %vm40_vm0, %v4293_v42, 0.0  ;;  %v1980_v52 = vmul.f32 %v4293_v42, %v4293_v42  ;;  %v1995_v34 = vsel %vm40_vm0, %v1979_v2, 0.0 }
 0x8ae   :  { %1919 = vadd.xlane.f32.xlu1 %v1918_v47  ;;  %v1832_v16 = vpop.f32.mrb[37].mxu1  ;;  %v2004_v7 = vsel %vm40_vm0, %v1982_v45, 0.0  ;;  %v1889_v14 = vadd.f32 %v3018_v46, %v4267_v57 }
 0x8af   :  { %1916 = vadd.xlane.f32.xlu0 %v1915_v36  ;;  %v3019_v63 = vpop.f32.mrb[38].mxu1  ;;  %v1998_v56 = vsel %vm40_vm0, %v1980_v52, 0.0  ;;  %v1887_v31 = vadd.f32 %v4267_v57, %v1832_v16  ;;  %v3350_v16 = vld [vmem:[%s4782_s0 + $0x40] sm:$0xff] }
 0x8b0   :  { %v1835_v29 = vpop.f32.mrb[39].mxu1  ;;  %v1890_v32 = vadd.f32 %v3019_v63, %v4267_v57  ;;  %v4330_v37 = vadd.f32 %v3345_v62, %v1889_v14 }
 0x8b1   :  { %v1888_v53 = vadd.f32 %v4267_v57, %v1835_v29  ;;  %v4341_v58 = vadd.f32 %v3346_v0, %v1887_v31  ;;  %v3110_v31 = vld [vmem:[%s4783_s1 + $0x4] ss:$8 sps:$4 sm:$0xff]   ;;  %v3111_v0 = vld [vmem:[%s4783_s1 + $0x14] ss:$8 sps:$4 sm:$0xff]  }
 0x8b2   :  { %2005 = vadd.xlane.f32.xlu1 %v2004_v7  ;;  %v4312_v24 = vadd.f32 %v3343_v39, %v1890_v32  ;;  %v1933_v6 = vsel %vm40_vm0, %v4330_v37, 0.0  ;;  %v1985_v28 = vmul.f32 %v4330_v37, %v4330_v37  ;;  %3028 = vmatprep.subr.bf16.mxu0 %v3110_v31 }
 0x8b3   :  { %1925 = vadd.xlane.f32.xlu0 %v1924_v25  ;;  %v4323_v60 = vadd.f32 %v3344_v23, %v1888_v53  ;;  %v1927_v49 = vsel %vm40_vm0, %v4341_v58, 0.0  ;;  %v1983_v33 = vmul.f32 %v4341_v58, %v4341_v58  ;;  %3029 = vmatpush3.bf16.msra.mxu0 %v3110_v31 }
 0x8b4   :  { %v1936_v51 = vsel %vm40_vm0, %v4312_v24, 0.0  ;;  %v1986_v40 = vmul.f32 %v4312_v24, %v4312_v24  ;;  %v2013_v11 = vsel %vm40_vm0, %v1985_v28, 0.0  ;;  %3030 = vmatprep.subr.bf16.mxu0 %v3111_v0 }
 0x8b5   :  { %v3022_v44 = vpop.f32.mrb[40].mxu1  ;;  %v1930_v10 = vsel %vm40_vm0, %v4323_v60, 0.0  ;;  %v1984_v50 = vmul.f32 %v4323_v60, %v4323_v60  ;;  %v2007_v46 = vsel %vm40_vm0, %v1983_v33, 0.0 }
 0x8b6   :  { %1999 = vadd.xlane.f32.xlu1 %v1998_v56  ;;  %v1848_v12 = vpop.f32.mrb[41].mxu1  ;;  %v2016_v4 = vsel %vm40_vm0, %v1986_v40, 0.0  ;;  %v1893_v27 = vadd.f32 %v3022_v44, %v4267_v57 }
 0x8b7   :  { %2002 = vadd.xlane.f32.xlu0 %v2001_v3  ;;  %v3023_v20 = vpop.f32.mrb[42].mxu1  ;;  %v2010_v22 = vsel %vm40_vm0, %v1984_v50, 0.0  ;;  %v1891_v5 = vadd.f32 %v4267_v57, %v1848_v12  ;;  %v3352_v3 = vld [vmem:[%s4782_s0 + $0x68] sm:$0xff]  ;;  %3031 = vmatpush3.bf16.msra.mxu0 %v3111_v0 }
 0x8b8   :  { %v1851_v13 = vpop.f32.mrb[43].mxu1  ;;  %v1894_v48 = vadd.f32 %v3023_v20, %v4267_v57  ;;  %v4374_v43 = vadd.f32 %v3349_v61, %v1893_v27 }
 0x8b9   :  { %v1892_v26 = vadd.f32 %v4267_v57, %v1851_v13  ;;  %v4385_v36 = vadd.f32 %v3350_v16, %v1891_v5  ;;  %v3353_v13 = vld [vmem:[%s4782_s0 + $0x70] sm:$0xff] }
 0x8ba   :  { %1937 = vadd.xlane.f32.xlu1 %v1936_v51  ;;  %v4356_v17 = vadd.f32 %v3347_v1, %v1894_v48  ;;  %v1945_v63 = vsel %vm40_vm0, %v4374_v43, 0.0  ;;  %v1989_v25 = vmul.f32 %v4374_v43, %v4374_v43 }
 0x8bb   :  { %1996 = vadd.xlane.f32.xlu0 %v1995_v34  ;;  %v4367_v21 = vadd.f32 %v3348_v55, %v1892_v26  ;;  %v1939_v52 = vsel %vm40_vm0, %v4385_v36, 0.0  ;;  %v1987_v12 = vmul.f32 %v4385_v36, %v4385_v36 }
 0x8bc   :  { %v1948_v15 = vsel %vm40_vm0, %v4356_v17, 0.0  ;;  %v1990_v45 = vmul.f32 %v4356_v17, %v4356_v17  ;;  %v2025_v14 = vsel %vm40_vm0, %v1989_v25, 0.0 }
 0x8bd   :  { %v3026_v35 = vpop.f32.mrb[44].mxu1  ;;  %v1942_v47 = vsel %vm40_vm0, %v4367_v21, 0.0  ;;  %v1988_v7 = vmul.f32 %v4367_v21, %v4367_v21  ;;  %v2019_v62 = vsel %vm40_vm0, %v1987_v12, 0.0 }
 0x8be   :  { %1931 = vadd.xlane.f32.xlu1 %v1930_v10  ;;  %v1864_v38 = vpop.f32.mrb[45].mxu1  ;;  %v2028_v32 = vsel %vm40_vm0, %v1990_v45, 0.0  ;;  %v1897_v56 = vadd.f32 %v3026_v35, %v4267_v57  ;;  %v3354_v10 = vld [vmem:[%s4782_s0 + $0x60] sm:$0xff] }
 0x8bf   :  { %1934 = vadd.xlane.f32.xlu0 %v1933_v6  ;;  %v3027_v8 = vpop.f32.mrb[46].mxu1  ;;  %v2022_v44 = vsel %vm40_vm0, %v1988_v7, 0.0  ;;  %v1895_v51 = vadd.f32 %v4267_v57, %v1864_v38 }
 0x8c0   :  { %v1867_v54 = vpop.f32.mrb[47].mxu1  ;;  %v1898_v29 = vadd.f32 %v3027_v8, %v4267_v57  ;;  %v4418_v23 = vadd.f32 %v3353_v13, %v1897_v56 }
 0x8c1   :  { %v1896_v53 = vadd.f32 %v4267_v57, %v1867_v54  ;;  %v4432_v57 = vadd.f32 %v3354_v10, %v1895_v51 }
 0x8c2   :  { %2017 = vadd.xlane.f32.xlu1 %v2016_v4  ;;  %v4400_v39 = vadd.f32 %v3351_v18, %v1898_v29  ;;  %v1957_v40 = vsel %vm40_vm0, %v4418_v23, 0.0  ;;  %v1993_v50 = vmul.f32 %v4418_v23, %v4418_v23 }
 0x8c3   :  { %1928 = vadd.xlane.f32.xlu0 %v1927_v49  ;;  %v4411_v2 = vadd.f32 %v3352_v3, %v1896_v53  ;;  %v1951_v8 = vsel %vm40_vm0, %v4432_v57, 0.0  ;;  %v1991_v54 = vmul.f32 %v4432_v57, %v4432_v57 }
 0x8c4   :  { %v1960_v20 = vsel %vm40_vm0, %v4400_v39, 0.0  ;;  %v1994_v6 = vmul.f32 %v4400_v39, %v4400_v39  ;;  %v2037_v49 = vsel %vm40_vm0, %v1993_v50, 0.0 }
 0x8c5   :  { %v1954_v34 = vsel %vm40_vm0, %v4411_v2, 0.0  ;;  %v1992_v35 = vmul.f32 %v4411_v2, %v4411_v2  ;;  %v2031_v4 = vsel %vm40_vm0, %v1991_v54, 0.0 }
 0x8c6   :  { %2011 = vadd.xlane.f32.xlu1 %v2010_v22  ;;  %v2040_v48 = vsel %vm40_vm0, %v1994_v6, 0.0 }
 0x8c7   :  { %2014 = vadd.xlane.f32.xlu0 %v2013_v11  ;;  %v2034_v38 = vsel %vm40_vm0, %v1992_v35, 0.0 }
 0x8ca   :  { %1949 = vadd.xlane.f32.xlu1 %v1948_v15 }
 0x8cb   :  { %2008 = vadd.xlane.f32.xlu0 %v2007_v46 }
 0x8ce   :  { %1943 = vadd.xlane.f32.xlu1 %v1942_v47 }
 0x8cf   :  { %1946 = vadd.xlane.f32.xlu0 %v1945_v63 }
 0x8d2   :  { %2029 = vadd.xlane.f32.xlu1 %v2028_v32 }
 0x8d3   :  { %1940 = vadd.xlane.f32.xlu0 %v1939_v52 }
 0x8d6   :  { %2023 = vadd.xlane.f32.xlu1 %v2022_v44 }
 0x8d7   :  { %2026 = vadd.xlane.f32.xlu0 %v2025_v14 }
 0x8da   :  { %1961 = vadd.xlane.f32.xlu1 %v1960_v20 }
 0x8db   :  { %2020 = vadd.xlane.f32.xlu0 %v2019_v62 }
 0x8de   :  { %1955 = vadd.xlane.f32.xlu1 %v1954_v34 }
 0x8df   :  { %1958 = vadd.xlane.f32.xlu0 %v1957_v40 }
 0x8e2   :  { %2035 = vadd.xlane.f32.xlu1 %v2034_v38 }
 0x8e3   :  { %1952 = vadd.xlane.f32.xlu0 %v1951_v8  ;;  %v2157_v8 = vsub.s32 2, %v3561_v41 }
 0x8e6   :  { %2041 = vadd.xlane.f32.xlu1 %v2040_v48 }
 0x8e7   :  { %2032 = vadd.xlane.f32.xlu0 %v2031_v4 }
 0x8eb   :  { %2038 = vadd.xlane.f32.xlu0 %v2037_v49 }
 0x8f7   :  { %2494 = vrot.lane.b32.xlu1 %v3111_v0, %s3356_s29 }
 0x901   :  { %2492 = vrot.lane.b32.xlu0 %v3110_v31, %s3356_s29 }
 0x938   :  { %v1923_v28 = vpop.xlane.xlu0 %1922 }
 0x939   :  { %v1965_v33 = vmul.f32 0.03125, %v1923_v28 }
 0x93b   :  { %v1920_v1 = vpop.xlane.xlu1 %1919  ;;  %v2061_v16 = vmul.f32 %v1965_v33, %v1965_v33  ;;  %v2093_v4 = vsub.f32 %v4274_v59, %v1965_v33 }
 0x93c   :  { %v1917_v26 = vpop.xlane.xlu0 %1916  ;;  %v1964_v27 = vmul.f32 0.03125, %v1920_v1 }
 0x93d   :  { %v4453_v63 = vmul.f32 0.03125, %v1917_v26 }
 0x93e   :  { %v2060_v46 = vmul.f32 %v1964_v27, %v1964_v27  ;;  %v2092_v50 = vsub.f32 %v4293_v42, %v1964_v27  ;;  %v4477_v27 = vrot.slane %v4264_v30, %v2157_v8 }
 0x93f   :  { %v2006_v22 = vpop.xlane.xlu1 %2005  ;;  %v2059_v56 = vmul.f32 %v4453_v63, %v4453_v63 }
 0x940   :  { %v1926_v11 = vpop.xlane.xlu0 %1925  ;;  %v2046_v15 = vmul.f32 0.03125, %v2006_v22 }
 0x941   :  { %v1966_v55 = vmul.f32 0.03125, %v1926_v11 }
 0x943   :  { %v2062_v61 = vmul.f32 %v1966_v55, %v1966_v55  ;;  %v2000_v5 = vpop.xlane.xlu1 %1999 }
 0x944   :  { %v2044_v47 = vmul.f32 0.03125, %v2000_v5  ;;  %v2003_v45 = vpop.xlane.xlu0 %2002  ;;  %v2177_v5 = vsub.s32 3, %v3561_v41 }
 0x945   :  { %v2078_v29 = vsub.f32 %v2046_v15, %v2062_v61  ;;  %v2045_v32 = vmul.f32 0.03125, %v2003_v45 }
 0x946   :  { %v2076_v7 = vsub.f32 %v2044_v47, %v2060_v46  ;;  %v2094_v46 = vsub.f32 %v4286_v19, %v1966_v55 }
 0x947   :  { %v2110_v52 = vadd.f32 1e-05, %v2078_v29  ;;  %v2077_v25 = vsub.f32 %v2045_v32, %v2061_v16  ;;  %v1938_v18 = vpop.xlane.xlu1 %1937  ;;  %v2091_v32 = vsub.f32 %v4281_v9, %v4453_v63 }
 0x948   :  { %v2108_v53 = vadd.f32 1e-05, %v2076_v7  ;;  %v1997_v44 = vpop.xlane.xlu0 %1996  ;;  %v4457_v13 = vmul.f32 0.03125, %v1938_v18 }
 0x949   :  { %3272 = vrsqrt.f32 %v2110_v52  ;;  %v2109_v14 = vadd.f32 1e-05, %v2077_v25  ;;  %v2043_v12 = vmul.f32 0.03125, %v1997_v44 }
 0x94a   :  { %3274 = vrsqrt.f32 %v2108_v53  ;;  %v2066_v34 = vmul.f32 %v4457_v13, %v4457_v13 }
 0x94b   :  { %3276 = vrsqrt.f32 %v2109_v14  ;;  %v2075_v3 = vsub.f32 %v2043_v12, %v2059_v56  ;;  %v1932_v20 = vpop.xlane.xlu1 %1931  ;;  %v4484_v56 = vrot.slane %v4264_v30, %v2177_v5 }
 0x94c   :  { %v1935_v51 = vpop.xlane.xlu0 %1934  ;;  %v4461_v35 = vmul.f32 0.03125, %v1932_v20 }
 0x94d   :  { %v2107_v62 = vadd.f32 1e-05, %v2075_v3  ;;  %v4463_v0 = vmul.f32 0.03125, %v1935_v51 }
 0x94e   :  { %v2064_v49 = vmul.f32 %v4461_v35, %v4461_v35 }
 0x94f   :  { %3278 = vrsqrt.f32 %v2107_v62  ;;  %v2018_v31 = vpop.xlane.xlu1 %2017  ;;  %v2065_v22 = vmul.f32 %v4463_v0, %v4463_v0 }
 0x950   :  { %v2050_v10 = vmul.f32 0.03125, %v2018_v31  ;;  %v1929_v40 = vpop.xlane.xlu0 %1928 }
 0x951   :  { %v4472_v15 = vmul.f32 0.03125, %v1929_v40 }
 0x952   :  { %v2082_v38 = vsub.f32 %v2050_v10, %v2066_v34 }
 0x953   :  { %v3273_v6 = vpop.eup %3272  ;;  %v2012_v54 = vpop.xlane.xlu1 %2011  ;;  %v2063_v53 = vmul.f32 %v4472_v15, %v4472_v15 }
 0x954   :  { %v3275_v48 = vpop.eup %3274  ;;  %v2048_v28 = vmul.f32 0.03125, %v2012_v54  ;;  %v2015_v1 = vpop.xlane.xlu0 %2014  ;;  %v2114_v11 = vadd.f32 1e-05, %v2082_v38  ;;  %v2142_v7 = vmul.f32 %v3273_v6, %v2094_v46 }
 0x955   :  { %v3277_v26 = vpop.eup %3276  ;;  %v2049_v61 = vmul.f32 0.03125, %v2015_v1  ;;  %v2140_v29 = vmul.f32 %v3275_v48, %v2092_v50 }
 0x956   :  { %v2141_v33 = vmul.f32 %v3277_v26, %v2093_v4  ;;  %v2080_v47 = vsub.f32 %v2048_v28, %v2064_v49  ;;  %3280 = vrsqrt.f32 %v2114_v11  ;;  %v2162_v51 = vmul.f32 %v4477_v27, %v2142_v7 }
 0x957   :  { %v2081_v45 = vsub.f32 %v2049_v61, %v2065_v22  ;;  %v1950_v16 = vpop.xlane.xlu1 %1949  ;;  %v2160_v20 = vmul.f32 %v4477_v27, %v2140_v29  ;;  %v2096_v61 = vsub.f32 %v4323_v60, %v4461_v35  ;;  %v2098_v35 = vsub.f32 %v4312_v24, %v4457_v13 }
 0x958   :  { %v2112_v52 = vadd.f32 1e-05, %v2080_v47  ;;  %v2009_v25 = vpop.xlane.xlu0 %2008  ;;  %v2161_v14 = vmul.f32 %v4477_v27, %v2141_v33  ;;  %v4489_v62 = vmul.f32 0.03125, %v1950_v16  ;;  %v2182_v54 = vadd.f32 %v4484_v56, %v2162_v51 }
 0x959   :  { %v3279_v18 = vpop.eup %3278  ;;  %v2113_v55 = vadd.f32 1e-05, %v2081_v45  ;;  %v2047_v44 = vmul.f32 0.03125, %v2009_v25  ;;  %v2180_v8 = vadd.f32 %v4484_v56, %v2160_v20  ;;  %v2097_v33 = vsub.f32 %v4330_v37, %v4463_v0 }
 0x95a   :  { %3282 = vrsqrt.f32 %v2112_v52  ;;  %v2139_v63 = vmul.f32 %v3279_v18, %v2091_v32  ;;  %v2181_v40 = vadd.f32 %v4484_v56, %v2161_v14  ;;  %v2070_v48 = vmul.f32 %v4489_v62, %v4489_v62 }
 0x95b   :  { %3284 = vrsqrt.f32 %v2113_v55  ;;  %v2079_v12 = vsub.f32 %v2047_v44, %v2063_v53  ;;  %v1944_v3 = vpop.xlane.xlu1 %1943 }
 0x95c   :  { %v1947_v31 = vpop.xlane.xlu0 %1946  ;;  %v2159_v10 = vmul.f32 %v4477_v27, %v2139_v63  ;;  %v4498_v4 = vmul.f32 0.03125, %v1944_v3  ;;  %v2196_v22 = vpack.c.bf16 %v2182_v54, %v2181_v40 }
 0x95d   :  { %v2111_v34 = vadd.f32 1e-05, %v2079_v12  ;;  %v4500_v28 = vmul.f32 0.03125, %v1947_v31  ;;  %v2095_v12 = vsub.f32 %v4341_v58, %v4472_v15 }
 0x95e   :  { %v2179_v6 = vadd.f32 %v4484_v56, %v2159_v10  ;;  %v2068_v47 = vmul.f32 %v4498_v4, %v4498_v4 }
 0x95f   :  { %3286 = vrsqrt.f32 %v2111_v34  ;;  %v2030_v38 = vpop.xlane.xlu1 %2029  ;;  %v2069_v7 = vmul.f32 %v4500_v28, %v4500_v28 }
 0x960   :  { %v2054_v50 = vmul.f32 0.03125, %v2030_v38  ;;  %v1941_v49 = vpop.xlane.xlu0 %1940  ;;  %v2195_v1 = vpack.c.bf16 %v2180_v8, %v2179_v6  ;;  %v3281_v11 = vpop.eup %3280 }
 0x961   :  { %v4509_v45 = vmul.f32 0.03125, %v1941_v49  ;;  %v2146_v14 = vmul.f32 %v3281_v11, %v2098_v35 }
 0x962   :  { %v2086_v26 = vsub.f32 %v2054_v50, %v2070_v48  ;;  %3032 = vmatprep.mubr.msk.bf16.mxu0 %vm40_vm0, %v2195_v1 }
 0x963   :  { %v2024_v5 = vpop.xlane.xlu1 %2023  ;;  %3033 = vmatmul.mubr.msk.bf16.vlgmr.msra.gmra.mrb[48].mxu0 %vm40_vm0, %v2196_v22  ;;  %v2067_v3 = vmul.f32 %v4509_v45, %v4509_v45  ;;  %v2166_v15 = vmul.f32 %v4477_v27, %v2146_v14 }
 0x964   :  { %v3283_v46 = vpop.eup %3282  ;;  %v2052_v16 = vmul.f32 0.03125, %v2024_v5  ;;  %v2027_v29 = vpop.xlane.xlu0 %2026  ;;  %v2118_v52 = vadd.f32 1e-05, %v2086_v26 }
 0x965   :  { %v3285_v32 = vpop.eup %3284  ;;  %v2053_v25 = vmul.f32 0.03125, %v2027_v29  ;;  %v2144_v0 = vmul.f32 %v3283_v46, %v2096_v61  ;;  %v2186_v11 = vadd.f32 %v4484_v56, %v2166_v15 }
 0x966   :  { %v2084_v18 = vsub.f32 %v2052_v16, %v2068_v47  ;;  %v2145_v53 = vmul.f32 %v3285_v32, %v2097_v33  ;;  %3288 = vrsqrt.f32 %v2118_v52 }
 0x967   :  { %v2085_v55 = vsub.f32 %v2053_v25, %v2069_v7  ;;  %v1962_v44 = vpop.xlane.xlu1 %1961  ;;  %v2164_v40 = vmul.f32 %v4477_v27, %v2144_v0  ;;  %v2100_v7 = vsub.f32 %v4367_v21, %v4498_v4 }
 0x968   :  { %v2116_v63 = vadd.f32 1e-05, %v2084_v18  ;;  %v2021_v20 = vpop.xlane.xlu0 %2020  ;;  %v2165_v34 = vmul.f32 %v4477_v27, %v2145_v53  ;;  %v4530_v61 = vmul.f32 0.03125, %v1962_v44  ;;  %v2101_v18 = vsub.f32 %v4374_v43, %v4500_v28 }
 0x969   :  { %v3287_v13 = vpop.eup %3286  ;;  %v2117_v51 = vadd.f32 1e-05, %v2085_v55  ;;  %v2051_v31 = vmul.f32 0.03125, %v2021_v20  ;;  %v2184_v26 = vadd.f32 %v4484_v56, %v2164_v40  ;;  %v2099_v28 = vsub.f32 %v4385_v36, %v4509_v45 }
 0x96a   :  { %3290 = vrsqrt.f32 %v2116_v63  ;;  %v2143_v10 = vmul.f32 %v3287_v13, %v2095_v12  ;;  %v2185_v49 = vadd.f32 %v4484_v56, %v2165_v34  ;;  %v2074_v0 = vmul.f32 %v4530_v61, %v4530_v61 }
 0x96b   :  { %3292 = vrsqrt.f32 %v2117_v51  ;;  %v2083_v38 = vsub.f32 %v2051_v31, %v2067_v3  ;;  %v1956_v6 = vpop.xlane.xlu1 %1955  ;;  %v2102_v12 = vsub.f32 %v4356_v17, %v4489_v62 }
 0x96c   :  { %v4523_v8 = vmul.f32 0.03125, %v1956_v6  ;;  %v1959_v54 = vpop.xlane.xlu0 %1958  ;;  %v2163_v48 = vmul.f32 %v4477_v27, %v2143_v10  ;;  %v2198_v29 = vpack.c.bf16 %v2186_v11, %v2185_v49 }
 0x96d   :  { %v2115_v50 = vadd.f32 1e-05, %v2083_v38  ;;  %v1977_v3 = vmul.f32 0.03125, %v1959_v54 }
 0x96e   :  { %v2183_v1 = vadd.f32 %v4484_v56, %v2163_v48  ;;  %v2072_v5 = vmul.f32 %v4523_v8, %v4523_v8 }
 0x96f   :  { %3294 = vrsqrt.f32 %v2115_v50  ;;  %v2036_v22 = vpop.xlane.xlu1 %2035  ;;  %v2073_v6 = vmul.f32 %v1977_v3, %v1977_v3 }
 0x970   :  { %v2056_v46 = vmul.f32 0.03125, %v2036_v22  ;;  %v1953_v33 = vpop.xlane.xlu0 %1952  ;;  %v2197_v47 = vpack.c.bf16 %v2184_v26, %v2183_v1  ;;  %v3289_v35 = vpop.eup %3288 }
 0x971   :  { %v1975_v16 = vmul.f32 0.03125, %v1953_v33  ;;  %v2150_v34 = vmul.f32 %v3289_v35, %v2102_v12 }
 0x972   :  { %v2088_v32 = vsub.f32 %v2056_v46, %v2072_v5  ;;  %3036 = vmatprep.mubr.msk.bf16.mxu0 %vm40_vm0, %v2197_v47  ;;  %v2104_v47 = vsub.f32 %v4411_v2, %v4523_v8  ;;  %v2105_v8 = vsub.f32 %v4418_v23, %v1977_v3 }
 0x973   :  { %3037 = vmatmul.mubr.msk.bf16.gmra.mrb[52].mxu0 %vm40_vm0, %v2198_v29  ;;  %v2042_v52 = vpop.xlane.xlu1 %2041  ;;  %v2071_v63 = vmul.f32 %v1975_v16, %v1975_v16  ;;  %v2170_v1 = vmul.f32 %v4477_v27, %v2150_v34 }
 0x974   :  { %v3291_v25 = vpop.eup %3290  ;;  %v2120_v53 = vadd.f32 1e-05, %v2088_v32  ;;  %v2058_v55 = vmul.f32 0.03125, %v2042_v52  ;;  %v2033_v44 = vpop.xlane.xlu0 %2032  ;;  %v2106_v52 = vsub.f32 %v4400_v39, %v4530_v61 }
 0x975   :  { %v3293_v14 = vpop.eup %3292  ;;  %v2055_v4 = vmul.f32 0.03125, %v2033_v44  ;;  %v2148_v13 = vmul.f32 %v3291_v25, %v2100_v7  ;;  %v2190_v46 = vadd.f32 %v4484_v56, %v2170_v1  ;;  %v2103_v25 = vsub.f32 %v4432_v57, %v1975_v16 }
 0x976   :  { %3296 = vrsqrt.f32 %v2120_v53  ;;  %v2090_v20 = vsub.f32 %v2058_v55, %v2074_v0  ;;  %v2149_v51 = vmul.f32 %v3293_v14, %v2101_v18 }
 0x977   :  { %v2087_v31 = vsub.f32 %v2055_v4, %v2071_v63  ;;  %v2168_v50 = vmul.f32 %v4477_v27, %v2148_v13  ;;  %v2495_v34 = vpop.permute.xlu1 %2494 }
 0x978   :  { %v2122_v10 = vadd.f32 1e-05, %v2090_v20  ;;  %v2039_v40 = vpop.xlane.xlu0 %2038  ;;  %v2169_v62 = vmul.f32 %v4477_v27, %v2149_v51 }
 0x979   :  { %v3295_v38 = vpop.eup %3294  ;;  %v2119_v15 = vadd.f32 1e-05, %v2087_v31  ;;  %v2057_v48 = vmul.f32 0.03125, %v2039_v40  ;;  %v2188_v5 = vadd.f32 %v4484_v56, %v2168_v50 }
 0x97a   :  { %3298 = vrsqrt.f32 %v2122_v10  ;;  %v2147_v54 = vmul.f32 %v3295_v38, %v2099_v28  ;;  %v2189_v45 = vadd.f32 %v4484_v56, %v2169_v62  ;;  %v2205_v28 = vsub.s32 5, %v3561_v41 }
 0x97b   :  { %3300 = vrsqrt.f32 %v2119_v15  ;;  %v2089_v49 = vsub.f32 %v2057_v48, %v2073_v6 }
 0x97c   :  { %v2167_v26 = vmul.f32 %v4477_v27, %v2147_v54  ;;  %v2200_v32 = vpack.c.bf16 %v2190_v46, %v2189_v45  ;;  %v2493_v31 = vpop.permute.xlu0 %2492  ;;  %v4574_v10 = vrot.slane %v4264_v30, %v2205_v28 }
 0x97d   :  { %v2121_v22 = vadd.f32 1e-05, %v2089_v49  ;;  %3048 = vmatprep.subr.bf16.mxu0 %v2493_v31 }
 0x97e   :  { %v2187_v11 = vadd.f32 %v4484_v56, %v2167_v26  ;;  %3049 = vmatpush3.bf16.msra.mxu0 %v2493_v31 }
 0x97f   :  { %3302 = vrsqrt.f32 %v2121_v22  ;;  %3050 = vmatprep.subr.bf16.mxu0 %v2495_v34 }
 0x980   :  { %v3297_v33 = vpop.eup %3296  ;;  %v2199_v29 = vpack.c.bf16 %v2188_v5, %v2187_v11 }
 0x981   :  { %v2152_v35 = vmul.f32 %v3297_v33, %v2104_v47 }
 0x982   :  { %3040 = vmatprep.mubr.msk.bf16.mxu0 %vm40_vm0, %v2199_v29  ;;  %3051 = vmatpush3.bf16.msra.mxu0 %v2495_v34 }
 0x983   :  { %3041 = vmatmul.mubr.msk.bf16.gmra.mrb[56].mxu0 %vm40_vm0, %v2200_v32  ;;  %v2172_v53 = vmul.f32 %v4477_v27, %v2152_v35 }
 0x984   :  { %v3299_v7 = vpop.eup %3298 }
 0x985   :  { %v3301_v18 = vpop.eup %3300  ;;  %v2154_v55 = vmul.f32 %v3299_v7, %v2106_v52  ;;  %v2192_v63 = vadd.f32 %v4484_v56, %v2172_v53 }
 0x986   :  { %v2151_v0 = vmul.f32 %v3301_v18, %v2103_v25 }
 0x987   :  { %v2174_v20 = vmul.f32 %v4477_v27, %v2154_v55 }
 0x988   :  { %v2171_v44 = vmul.f32 %v4477_v27, %v2151_v0 }
 0x989   :  { %v3303_v14 = vpop.eup %3302  ;;  %v2194_v51 = vadd.f32 %v4484_v56, %v2174_v20 }
 0x98a   :  { %v2191_v12 = vadd.f32 %v4484_v56, %v2171_v44  ;;  %v2153_v4 = vmul.f32 %v3303_v14, %v2105_v8 }
 0x98c   :  { %v2201_v61 = vpack.c.bf16 %v2192_v63, %v2191_v12  ;;  %v2173_v16 = vmul.f32 %v4477_v27, %v2153_v4 }
 0x98e   :  { %3044 = vmatprep.mubr.msk.bf16.mxu0 %vm40_vm0, %v2201_v61  ;;  %v2193_v13 = vadd.f32 %v4484_v56, %v2173_v16 }
 0x990   :  { %v2202_v3 = vpack.c.bf16 %v2194_v51, %v2193_v13 }
 0x992   :  { %3045 = vmatmul.mubr.msk.bf16.gmra.mrb[60].mxu0 %vm40_vm0, %v2202_v3 }
 0xa36   :  { %v3034_v27 = vpop.f32.mrb[48].mxu0 }
 0xa37   :  { %v4577_v40 = vadd.f32 %v3034_v27, %v4574_v10  ;;  %v2273_v38 = vpop.f32.mrb[49].mxu0 }
 0xa38   :  { %v4580_v56 = vadd.f32 %v2273_v38, %v4574_v10  ;;  %v3035_v6 = vpop.f32.mrb[50].mxu0 }
 0xa39   :  { %v2338_v15 = vmul.f32 %v4577_v40, %v4577_v40  ;;  %v4585_v48 = vadd.f32 %v3035_v6, %v4574_v10  ;;  %v2276_v62 = vpop.f32.mrb[51].mxu0 }
 0xa3a   :  { %v2336_v30 = vmul.f32 %v4580_v56, %v4580_v56  ;;  %v4590_v54 = vadd.f32 %v2276_v62, %v4574_v10 }
 0xa3b   :  { %v2354_v50 = vmul.f32 %v2338_v15, %v4577_v40  ;;  %v2339_v49 = vmul.f32 %v4585_v48, %v4585_v48 }
 0xa3c   :  { %v2352_v1 = vmul.f32 %v2336_v30, %v4580_v56  ;;  %v2337_v26 = vmul.f32 %v4590_v54, %v4590_v54 }
 0xa3d   :  { %v2370_v22 = vmul.f32 0.044715, %v2354_v50  ;;  %v2355_v45 = vmul.f32 %v2339_v49, %v4585_v48 }
 0xa3e   :  { %v2368_v11 = vmul.f32 0.044715, %v2352_v1  ;;  %v2353_v5 = vmul.f32 %v2337_v26, %v4590_v54 }
 0xa3f   :  { %v2386_v46 = vadd.f32 %v2370_v22, %v4577_v40  ;;  %v2371_v33 = vmul.f32 0.044715, %v2355_v45 }
 0xa40   :  { %v2384_v47 = vadd.f32 %v2368_v11, %v4580_v56  ;;  %v2369_v29 = vmul.f32 0.044715, %v2353_v5 }
 0xa41   :  { %v2402_v32 = vmul.f32 0.7978846, %v2386_v46  ;;  %v2387_v35 = vadd.f32 %v2371_v33, %v4585_v48 }
 0xa42   :  { %v2400_v7 = vmul.f32 0.7978846, %v2384_v47  ;;  %v2385_v52 = vadd.f32 %v2369_v29, %v4590_v54 }
 0xa43   :  { %3304 = vtanh.f32 %v2402_v32  ;;  %v2403_v25 = vmul.f32 0.7978846, %v2387_v35 }
 0xa44   :  { %3306 = vtanh.f32 %v2400_v7  ;;  %v2401_v18 = vmul.f32 0.7978846, %v2385_v52 }
 0xa45   :  { %3308 = vtanh.f32 %v2403_v25 }
 0xa46   :  { %v3038_v0 = vpop.f32.mrb[52].mxu0  ;;  %3310 = vtanh.f32 %v2401_v18 }
 0xa47   :  { %v4605_v53 = vadd.f32 %v3038_v0, %v4574_v10  ;;  %v2289_v55 = vpop.f32.mrb[53].mxu0 }
 0xa48   :  { %v4608_v8 = vadd.f32 %v2289_v55, %v4574_v10  ;;  %v3039_v44 = vpop.f32.mrb[54].mxu0 }
 0xa49   :  { %v2342_v14 = vmul.f32 %v4605_v53, %v4605_v53  ;;  %v4613_v12 = vadd.f32 %v3039_v44, %v4574_v10  ;;  %v2292_v63 = vpop.f32.mrb[55].mxu0 }
 0xa4a   :  { %v2340_v4 = vmul.f32 %v4608_v8, %v4608_v8  ;;  %v4618_v20 = vadd.f32 %v2292_v63, %v4574_v10 }
 0xa4b   :  { %v2358_v61 = vmul.f32 %v2342_v14, %v4605_v53  ;;  %v2343_v16 = vmul.f32 %v4613_v12, %v4613_v12 }
 0xa4c   :  { %v2356_v13 = vmul.f32 %v2340_v4, %v4608_v8  ;;  %v2341_v51 = vmul.f32 %v4618_v20, %v4618_v20 }
 0xa4d   :  { %v2374_v3 = vmul.f32 0.044715, %v2358_v61  ;;  %v2359_v31 = vmul.f32 %v2343_v16, %v4613_v12  ;;  %v3305_v34 = vpop.eup %3304 }
 0xa4e   :  { %v2372_v28 = vmul.f32 0.044715, %v2356_v13  ;;  %v2357_v27 = vmul.f32 %v2341_v51, %v4618_v20  ;;  %v3307_v38 = vpop.eup %3306  ;;  %v2434_v6 = vadd.f32 1.0, %v3305_v34 }
 0xa4f   :  { %v2390_v15 = vadd.f32 %v2374_v3, %v4605_v53  ;;  %v2375_v62 = vmul.f32 0.044715, %v2359_v31  ;;  %v3309_v30 = vpop.eup %3308  ;;  %v2432_v50 = vadd.f32 1.0, %v3307_v38 }
 0xa50   :  { %v2388_v49 = vadd.f32 %v2372_v28, %v4608_v8  ;;  %v2373_v1 = vmul.f32 0.044715, %v2357_v27  ;;  %v3311_v26 = vpop.eup %3310  ;;  %v2450_v22 = vmul.f32 0.5, %v2434_v6  ;;  %v2435_v45 = vadd.f32 1.0, %v3309_v30 }
 0xa51   :  { %v2406_v11 = vmul.f32 0.7978846, %v2390_v15  ;;  %v2391_v5 = vadd.f32 %v2375_v62, %v4613_v12  ;;  %v2448_v46 = vmul.f32 0.5, %v2432_v50  ;;  %v2433_v33 = vadd.f32 1.0, %v3311_v26 }
 0xa52   :  { %v2404_v47 = vmul.f32 0.7978846, %v2388_v49  ;;  %v2389_v29 = vadd.f32 %v2373_v1, %v4618_v20  ;;  %v2451_v32 = vmul.f32 0.5, %v2435_v45  ;;  %v2466_v25 = vmul.f32 %v2450_v22, %v4577_v40 }
 0xa53   :  { %3312 = vtanh.f32 %v2406_v11  ;;  %v2407_v35 = vmul.f32 0.7978846, %v2391_v5  ;;  %v2449_v7 = vmul.f32 0.5, %v2433_v33  ;;  %v2464_v0 = vmul.f32 %v2448_v46, %v4580_v56 }
 0xa54   :  { %3314 = vtanh.f32 %v2404_v47  ;;  %v2405_v52 = vmul.f32 0.7978846, %v2389_v29  ;;  %v2467_v18 = vmul.f32 %v2451_v32, %v4585_v48 }
 0xa55   :  { %3316 = vtanh.f32 %v2407_v35  ;;  %v2465_v55 = vmul.f32 %v2449_v7, %v4590_v54 }
 0xa56   :  { %3318 = vtanh.f32 %v2405_v52  ;;  %v3042_v44 = vpop.f32.mrb[56].mxu0  ;;  %v2481_v14 = vpack.c.bf16 %v2467_v18, %v2466_v25 }
 0xa57   :  { %v4637_v63 = vadd.f32 %v3042_v44, %v4574_v10  ;;  %v2305_v4 = vpop.f32.mrb[57].mxu0  ;;  %v2480_v13 = vpack.c.bf16 %v2465_v55, %v2464_v0 }
 0xa58   :  { %v4640_v61 = vadd.f32 %v2305_v4, %v4574_v10  ;;  %v3043_v16 = vpop.f32.mrb[58].mxu0 }
 0xa59   :  { %v2346_v40 = vmul.f32 %v4637_v63, %v4637_v63  ;;  %v4645_v48 = vadd.f32 %v3043_v16, %v4574_v10  ;;  %v2308_v56 = vpop.f32.mrb[59].mxu0  ;;  %3052 = vmatprep.mubr.msk.bf16.mxu0 %vm40_vm0, %v2480_v13 }
 0xa5a   :  { %v2344_v54 = vmul.f32 %v4640_v61, %v4640_v61  ;;  %v4650_v51 = vadd.f32 %v2308_v56, %v4574_v10  ;;  %3053 = vmatmul.mubr.msk.bf16.vlgmr.msra.gmra.mrb[64].mxu0 %vm40_vm0, %v2481_v14 }
 0xa5b   :  { %v2362_v3 = vmul.f32 %v2346_v40, %v4637_v63  ;;  %v2347_v31 = vmul.f32 %v4645_v48, %v4645_v48 }
 0xa5c   :  { %v2360_v34 = vmul.f32 %v2344_v54, %v4640_v61  ;;  %v2345_v28 = vmul.f32 %v4650_v51, %v4650_v51 }
 0xa5d   :  { %v3313_v27 = vpop.eup %3312  ;;  %v2378_v38 = vmul.f32 0.044715, %v2362_v3  ;;  %v2363_v6 = vmul.f32 %v2347_v31, %v4645_v48 }
 0xa5e   :  { %v3315_v15 = vpop.eup %3314  ;;  %v2438_v62 = vadd.f32 1.0, %v3313_v27  ;;  %v2376_v30 = vmul.f32 0.044715, %v2360_v34  ;;  %v2361_v50 = vmul.f32 %v2345_v28, %v4650_v51 }
 0xa5f   :  { %v3317_v49 = vpop.eup %3316  ;;  %v2436_v1 = vadd.f32 1.0, %v3315_v15  ;;  %v2394_v26 = vadd.f32 %v2378_v38, %v4637_v63  ;;  %v2379_v22 = vmul.f32 0.044715, %v2363_v6 }
 0xa60   :  { %v3319_v45 = vpop.eup %3318  ;;  %v2454_v11 = vmul.f32 0.5, %v2438_v62  ;;  %v2439_v5 = vadd.f32 1.0, %v3317_v49  ;;  %v2392_v46 = vadd.f32 %v2376_v30, %v4640_v61  ;;  %v2377_v33 = vmul.f32 0.044715, %v2361_v50 }
 0xa61   :  { %v2452_v47 = vmul.f32 0.5, %v2436_v1  ;;  %v2437_v29 = vadd.f32 1.0, %v3319_v45  ;;  %v2410_v32 = vmul.f32 0.7978846, %v2394_v26  ;;  %v2395_v35 = vadd.f32 %v2379_v22, %v4645_v48 }
 0xa62   :  { %v2455_v7 = vmul.f32 0.5, %v2439_v5  ;;  %v2408_v52 = vmul.f32 0.7978846, %v2392_v46  ;;  %v2393_v25 = vadd.f32 %v2377_v33, %v4650_v51  ;;  %v2470_v55 = vmul.f32 %v2454_v11, %v4605_v53 }
 0xa63   :  { %v2453_v18 = vmul.f32 0.5, %v2437_v29  ;;  %3320 = vtanh.f32 %v2410_v32  ;;  %v2411_v0 = vmul.f32 0.7978846, %v2395_v35  ;;  %v2468_v4 = vmul.f32 %v2452_v47, %v4608_v8 }
 0xa64   :  { %v2471_v44 = vmul.f32 %v2455_v7, %v4613_v12  ;;  %3322 = vtanh.f32 %v2408_v52  ;;  %v2409_v14 = vmul.f32 0.7978846, %v2393_v25 }
 0xa65   :  { %v2469_v16 = vmul.f32 %v2453_v18, %v4618_v20  ;;  %3324 = vtanh.f32 %v2411_v0  ;;  %v3046_v13 = vpop.f32.mrb[60].mxu0 }
 0xa66   :  { %3326 = vtanh.f32 %v2409_v14  ;;  %v4671_v40 = vadd.f32 %v3046_v13, %v4574_v10  ;;  %v2321_v56 = vpop.f32.mrb[61].mxu0  ;;  %v2483_v54 = vpack.c.bf16 %v2471_v44, %v2470_v55 }
 0xa67   :  { %v4674_v3 = vadd.f32 %v2321_v56, %v4574_v10  ;;  %v3047_v53 = vpop.f32.mrb[62].mxu0  ;;  %v2482_v31 = vpack.c.bf16 %v2469_v16, %v2468_v4 }
 0xa68   :  { %v2350_v12 = vmul.f32 %v4671_v40, %v4671_v40  ;;  %v2333_v8 = vadd.f32 %v3047_v53, %v4574_v10  ;;  %v2324_v34 = vpop.f32.mrb[63].mxu0 }
 0xa69   :  { %v2348_v20 = vmul.f32 %v4674_v3, %v4674_v3  ;;  %v2325_v28 = vadd.f32 %v2324_v34, %v4574_v10  ;;  %3056 = vmatprep.mubr.msk.bf16.mxu0 %vm40_vm0, %v2482_v31 }
 0xa6a   :  { %v2366_v27 = vmul.f32 %v2350_v12, %v4671_v40  ;;  %v2351_v38 = vmul.f32 %v2333_v8, %v2333_v8  ;;  %3057 = vmatmul.mubr.msk.bf16.gmra.mrb[68].mxu0 %vm40_vm0, %v2483_v54 }
 0xa6b   :  { %v2364_v6 = vmul.f32 %v2348_v20, %v4674_v3  ;;  %v2349_v15 = vmul.f32 %v2325_v28, %v2325_v28 }
 0xa6c   :  { %v2382_v62 = vmul.f32 0.044715, %v2366_v27  ;;  %v2367_v30 = vmul.f32 %v2351_v38, %v2333_v8 }
 0xa6d   :  { %v3321_v50 = vpop.eup %3320  ;;  %v2380_v49 = vmul.f32 0.044715, %v2364_v6  ;;  %v2365_v1 = vmul.f32 %v2349_v15, %v2325_v28 }
 0xa6e   :  { %v3323_v26 = vpop.eup %3322  ;;  %v2442_v22 = vadd.f32 1.0, %v3321_v50  ;;  %v2398_v45 = vadd.f32 %v2382_v62, %v4671_v40  ;;  %v2383_v10 = vmul.f32 0.044715, %v2367_v30 }
 0xa6f   :  { %v3325_v11 = vpop.eup %3324  ;;  %v2440_v5 = vadd.f32 1.0, %v3323_v26  ;;  %v2396_v46 = vadd.f32 %v2380_v49, %v4674_v3  ;;  %v2381_v33 = vmul.f32 0.044715, %v2365_v1 }
 0xa70   :  { %v3327_v47 = vpop.eup %3326  ;;  %v2458_v29 = vmul.f32 0.5, %v2442_v22  ;;  %v2443_v32 = vadd.f32 1.0, %v3325_v11  ;;  %v2414_v35 = vmul.f32 0.7978846, %v2398_v45  ;;  %v2399_v7 = vadd.f32 %v2383_v10, %v2333_v8  ;;  %v3355_v10 = vld [vmem:[%s4784_s2] sm:$0xff] }
 0xa71   :  { %v2456_v52 = vmul.f32 0.5, %v2440_v5  ;;  %v2441_v25 = vadd.f32 1.0, %v3327_v47  ;;  %v2412_v18 = vmul.f32 0.7978846, %v2396_v46  ;;  %v2397_v0 = vadd.f32 %v2381_v33, %v2325_v28 }
 0xa72   :  { %v2459_v55 = vmul.f32 0.5, %v2443_v32  ;;  %3328 = vtanh.f32 %v2414_v35  ;;  %v2415_v44 = vmul.f32 0.7978846, %v2399_v7  ;;  %v2474_v16 = vmul.f32 %v2458_v29, %v4637_v63 }
 0xa73   :  { %v2457_v14 = vmul.f32 0.5, %v2441_v25  ;;  %3330 = vtanh.f32 %v2412_v18  ;;  %v2413_v4 = vmul.f32 0.7978846, %v2397_v0  ;;  %v2472_v56 = vmul.f32 %v2456_v52, %v4640_v61 }
 0xa74   :  { %v2475_v13 = vmul.f32 %v2459_v55, %v4645_v48  ;;  %3332 = vtanh.f32 %v2415_v44  ;;  %v2490_v45 = vsub.s32 6, %v3561_v41 }
 0xa75   :  { %v2473_v54 = vmul.f32 %v2457_v14, %v4650_v51  ;;  %3334 = vtanh.f32 %v2413_v4 }
 0xa76   :  { %v2485_v53 = vpack.c.bf16 %v2475_v13, %v2474_v16  ;;  %v2491_v11 = vrot.slane %v3355_v10, %v2490_v45 }
 0xa77   :  { %v2484_v31 = vpack.c.bf16 %v2473_v54, %v2472_v56 }
 0xa79   :  { %3060 = vmatprep.mubr.msk.bf16.mxu0 %vm40_vm0, %v2484_v31 }
 0xa7a   :  { %3061 = vmatmul.mubr.msk.bf16.gmra.mrb[72].mxu0 %vm40_vm0, %v2485_v53 }
 0xa7c   :  { %v3329_v12 = vpop.eup %3328 }
 0xa7d   :  { %v3331_v34 = vpop.eup %3330  ;;  %v2446_v20 = vadd.f32 1.0, %v3329_v12 }
 0xa7e   :  { %v3333_v27 = vpop.eup %3332  ;;  %v2444_v38 = vadd.f32 1.0, %v3331_v34 }
 0xa7f   :  { %v3335_v63 = vpop.eup %3334  ;;  %v2462_v6 = vmul.f32 0.5, %v2446_v20  ;;  %v2447_v48 = vadd.f32 1.0, %v3333_v27 }
 0xa80   :  { %v2460_v15 = vmul.f32 0.5, %v2444_v38  ;;  %v2445_v62 = vadd.f32 1.0, %v3335_v63 }
 0xa81   :  { %v2463_v61 = vmul.f32 0.5, %v2447_v48  ;;  %v2478_v51 = vmul.f32 %v2462_v6, %v4671_v40 }
 0xa82   :  { %v2461_v30 = vmul.f32 0.5, %v2445_v62  ;;  %v2476_v49 = vmul.f32 %v2460_v15, %v4674_v3 }
 0xa83   :  { %v2479_v50 = vmul.f32 %v2463_v61, %v2333_v8 }
 0xa84   :  { %v2477_v1 = vmul.f32 %v2461_v30, %v2325_v28 }
 0xa85   :  { %v2487_v26 = vpack.c.bf16 %v2479_v50, %v2478_v51 }
 0xa86   :  { %v2486_v22 = vpack.c.bf16 %v2477_v1, %v2476_v49 }
 0xa88   :  { %3064 = vmatprep.mubr.msk.bf16.mxu0 %vm40_vm0, %v2486_v22 }
 0xa89   :  { %3065 = vmatmul.mubr.msk.bf16.gmra.mrb[76].mxu0 %vm40_vm0, %v2487_v26 }
 0xb2d   :  { %v3054_v5 = vpop.f32.mrb[64].mxu0 }
 0xb2e   :  { %v2565_v46 = vadd.f32 %v3054_v5, %v2491_v11  ;;  %v2556_v40 = vpop.f32.mrb[65].mxu0 }
 0xb2f   :  { %v2557_v8 = vadd.f32 %v2556_v40, %v2491_v11  ;;  %v3055_v33 = vpop.f32.mrb[66].mxu0 }
 0xb30   :  { %v2621_v3 = vadd.f32 %v2565_v46, %v4274_v59  ;;  %v2568_v28 = vadd.f32 %v3055_v33, %v2491_v11  ;;  %v2559_v47 = vpop.f32.mrb[67].mxu0 }
 0xb31   :  { %v2619_v29 = vadd.f32 %v2557_v8, %v4281_v9  ;;  %v2560_v32 = vadd.f32 %v2559_v47, %v2491_v11 }
 0xb32   :  { %2637 = vst.msk [vmem:[%s4786_s4 + $0x10] sm:$0xff] %vm40_vm0, %v2621_v3  ;;  %v2622_v41 = vadd.f32 %v2568_v28, %v4286_v19 }
 0xb33   :  { %2635 = vst.msk [vmem:[%s4786_s4] sm:$0xff] %vm40_vm0, %v2619_v29  ;;  %v2620_v35 = vadd.f32 %v2560_v32, %v4293_v42 }
 0xb34   :  { %2638 = vst.msk [vmem:[%s4786_s4 + $0x18] sm:$0xff] %vm40_vm0, %v2622_v41 }
 0xb35   :  { %2636 = vst.msk [vmem:[%s4786_s4 + $0x8] sm:$0xff] %vm40_vm0, %v2620_v35 }
 0xb3d   :  { %v3058_v59 = vpop.f32.mrb[68].mxu0 }
 0xb3e   :  { %v2581_v9 = vadd.f32 %v3058_v59, %v2491_v11  ;;  %v2572_v19 = vpop.f32.mrb[69].mxu0 }
 0xb3f   :  { %v2573_v7 = vadd.f32 %v2572_v19, %v2491_v11  ;;  %v3059_v52 = vpop.f32.mrb[70].mxu0 }
 0xb40   :  { %v2625_v25 = vadd.f32 %v2581_v9, %v4330_v37  ;;  %v2584_v18 = vadd.f32 %v3059_v52, %v2491_v11  ;;  %v2575_v0 = vpop.f32.mrb[71].mxu0 }
 0xb41   :  { %v2623_v42 = vadd.f32 %v2573_v7, %v4341_v58  ;;  %v2576_v55 = vadd.f32 %v2575_v0, %v2491_v11 }
 0xb42   :  { %2641 = vst.msk [vmem:[%s4786_s4 + $0x30] sm:$0xff] %vm40_vm0, %v2625_v25  ;;  %v2626_v44 = vadd.f32 %v2584_v18, %v4312_v24 }
 0xb43   :  { %2639 = vst.msk [vmem:[%s4786_s4 + $0x20] sm:$0xff] %vm40_vm0, %v2623_v42  ;;  %v2624_v14 = vadd.f32 %v2576_v55, %v4323_v60 }
 0xb44   :  { %2642 = vst.msk [vmem:[%s4786_s4 + $0x38] sm:$0xff] %vm40_vm0, %v2626_v44 }
 0xb45   :  { %2640 = vst.msk [vmem:[%s4786_s4 + $0x28] sm:$0xff] %vm40_vm0, %v2624_v14 }
 0xb4d   :  { %v3062_v37 = vpop.f32.mrb[72].mxu0 }
 0xb4e   :  { %v2597_v58 = vadd.f32 %v3062_v37, %v2491_v11  ;;  %v2588_v24 = vpop.f32.mrb[73].mxu0 }
 0xb4f   :  { %v2589_v4 = vadd.f32 %v2588_v24, %v2491_v11  ;;  %v3063_v16 = vpop.f32.mrb[74].mxu0 }
 0xb50   :  { %v2629_v13 = vadd.f32 %v2597_v58, %v4374_v43  ;;  %v2600_v56 = vadd.f32 %v3063_v16, %v2491_v11  ;;  %v2591_v54 = vpop.f32.mrb[75].mxu0 }
 0xb51   :  { %v2627_v60 = vadd.f32 %v2589_v4, %v4385_v36  ;;  %v2592_v53 = vadd.f32 %v2591_v54, %v2491_v11 }
 0xb52   :  { %2645 = vst.msk [vmem:[%s4786_s4 + $0x50] sm:$0xff] %vm40_vm0, %v2629_v13  ;;  %v2630_v31 = vadd.f32 %v2600_v56, %v4356_v17 }
 0xb53   :  { %2643 = vst.msk [vmem:[%s4786_s4 + $0x40] sm:$0xff] %vm40_vm0, %v2627_v60  ;;  %v2628_v12 = vadd.f32 %v2592_v53, %v4367_v21 }
 0xb54   :  { %2646 = vst.msk [vmem:[%s4786_s4 + $0x58] sm:$0xff] %vm40_vm0, %v2630_v31 }
 0xb55   :  { %2644 = vst.msk [vmem:[%s4786_s4 + $0x48] sm:$0xff] %vm40_vm0, %v2628_v12 }
 0xb5c   :  { %v3066_v43 = vpop.f32.mrb[76].mxu0 }
 0xb5d   :  { %v2613_v36 = vadd.f32 %v3066_v43, %v2491_v11  ;;  %v2604_v17 = vpop.f32.mrb[77].mxu0 }
 0xb5e   :  { %v2605_v34 = vadd.f32 %v2604_v17, %v2491_v11  ;;  %v3067_v20 = vpop.f32.mrb[78].mxu0 }
 0xb5f   :  { %v2633_v27 = vadd.f32 %v2613_v36, %v4418_v23  ;;  %v2616_v38 = vadd.f32 %v3067_v20, %v2491_v11  ;;  %v2607_v63 = vpop.f32.mrb[79].mxu0 }
 0xb60   :  { %v2631_v21 = vadd.f32 %v2605_v34, %v4432_v57  ;;  %v2608_v6 = vadd.f32 %v2607_v63, %v2491_v11 }
 0xb61   :  { %2649 = vst.msk [vmem:[%s4786_s4 + $0x70] sm:$0xff] %vm40_vm0, %v2633_v27  ;;  %v2634_v48 = vadd.f32 %v2616_v38, %v4400_v39 }
 0xb62   :  { %2647 = vst.msk [vmem:[%s4786_s4 + $0x60] sm:$0xff] %vm40_vm0, %v2631_v21  ;;  %v2632_v15 = vadd.f32 %v2608_v6, %v4411_v2 }
 0xb63   :  { %2650 = vst.msk [vmem:[%s4786_s4 + $0x78] sm:$0xff] %vm40_vm0, %v2634_v48 }
 0xb64   :  { %2648 = vst.msk [vmem:[%s4786_s4 + $0x68] sm:$0xff] %vm40_vm0, %v2632_v15 }

</bundles_post_ra>
